<compile_context>
chip_gen: v7x
topology: tpu7x:2x2x1
jax: 0.10.0
libtpu: 0.0.40
codegen_flags: <defaults>
</compile_context>

<pallas_src>
import functools

import jax
import jax.numpy as jnp
from jax import lax
from jax.experimental import pallas as pl
from jax.experimental.pallas import tpu as pltpu


# ----------------------------------------------------------------------------
# Tile-size helper: largest multiple of `quantum` that divides `dim` and is
# <= `pref`; falls back to the full dim (always a legal block size).
# ----------------------------------------------------------------------------
def _pick_tile(dim, pref, quantum):
    if dim <= pref:
        return dim
    t = (pref // quantum) * quantum
    while t >= quantum:
        if dim % t == 0:
            return t
        t -= quantum
    return dim


# ----------------------------------------------------------------------------
# Tiled matmul kernels:  (M,K) @ (K,N) [+ bias(1,N)] -> (M,N)
# ----------------------------------------------------------------------------
def _matmul_kernel(a_ref, b_ref, o_ref, acc_ref):
    k = pl.program_id(2)

    @pl.when(k == 0)
    def _():
        acc_ref[...] = jnp.zeros_like(acc_ref)

    acc_ref[...] += jnp.dot(
        a_ref[...], b_ref[...], preferred_element_type=jnp.float32
    )

    @pl.when(k == pl.num_programs(2) - 1)
    def _():
        o_ref[...] = acc_ref[...].astype(o_ref.dtype)


def _matmul_bias_kernel(a_ref, b_ref, bias_ref, o_ref, acc_ref):
    k = pl.program_id(2)

    @pl.when(k == 0)
    def _():
        acc_ref[...] = jnp.zeros_like(acc_ref)

    acc_ref[...] += jnp.dot(
        a_ref[...], b_ref[...], preferred_element_type=jnp.float32
    )

    @pl.when(k == pl.num_programs(2) - 1)
    def _():
        o_ref[...] = (acc_ref[...] + bias_ref[...].astype(jnp.float32)).astype(
            o_ref.dtype
        )


def matmul_pallas(a, b, bias=None, *, tm_pref=512, tn_pref=512, tk_pref=512):
    M, K = a.shape
    K2, N = b.shape
    assert K == K2, "inner dims must match"

    tm = _pick_tile(M, tm_pref, 8)
    tn = _pick_tile(N, tn_pref, 128)
    tk = _pick_tile(K, tk_pref, 128)
    grid = (M // tm, N // tn, K // tk)

    a_spec = pl.BlockSpec((tm, tk), lambda i, j, k: (i, k))
    b_spec = pl.BlockSpec((tk, tn), lambda i, j, k: (k, j))
    o_spec = pl.BlockSpec((tm, tn), lambda i, j, k: (i, j))
    scratch = [pltpu.VMEM((tm, tn), jnp.float32)]
    cparams = pltpu.CompilerParams(
        dimension_semantics=("parallel", "parallel", "arbitrary"),
        vmem_limit_bytes=64 * 1024 * 1024,
    )

    if bias is None:
        return pl.pallas_call(
            _matmul_kernel,
            out_shape=jax.ShapeDtypeStruct((M, N), a.dtype),
            grid_spec=pltpu.PrefetchScalarGridSpec(
                num_scalar_prefetch=0,
                grid=grid,
                in_specs=[a_spec, b_spec],
                out_specs=o_spec,
                scratch_shapes=scratch,
            ),
            compiler_params=cparams,
        )(a, b)

    bias2 = bias.reshape(1, N).astype(a.dtype)
    bias_spec = pl.BlockSpec((1, tn), lambda i, j, k: (0, j))
    return pl.pallas_call(
        _matmul_bias_kernel,
        out_shape=jax.ShapeDtypeStruct((M, N), a.dtype),
        grid_spec=pltpu.PrefetchScalarGridSpec(
            num_scalar_prefetch=0,
            grid=grid,
            in_specs=[a_spec, b_spec, bias_spec],
            out_specs=o_spec,
            scratch_shapes=scratch,
        ),
        compiler_params=cparams,
    )(a, b, bias2)


# ----------------------------------------------------------------------------
# Flash-attention forward kernel (online softmax), reading q/k/v directly from
# the fused qkv buffer and writing out in 'b n (h d)' layout.
#   grid = (B, heads // hp, N // tq, N // tkv);  hp heads packed per step.
# ----------------------------------------------------------------------------
def _flash_attn_kernel(q_ref, k_ref, v_ref, o_ref, m_sc, l_sc, acc_sc,
                       *, scale, hp, head_dim):
    kv_idx = pl.program_id(3)

    @pl.when(kv_idx == 0)
    def _():
        m_sc[...] = jnp.full_like(m_sc, -jnp.inf)
        l_sc[...] = jnp.zeros_like(l_sc)
        acc_sc[...] = jnp.zeros_like(acc_sc)

    # Fold the softmax scale into q once (small tile) instead of scaling the
    # (tq, tkv) score matrix every step. Operands stay in their native dtype;
    # the MXU accumulates in f32 via preferred_element_type.
    q_all = q_ref[...] * scale          # (tq, hp*head_dim)
    k_all = k_ref[...]                  # (tkv, hp*head_dim)
    v_all = v_ref[...]                  # (tkv, hp*head_dim)

    for h in range(hp):                 # static unroll over packed heads
        lo, hi = h * head_dim, (h + 1) * head_dim
        qh = q_all[:, lo:hi]            # (tq, d)
        kh = k_all[:, lo:hi]            # (tkv, d)
        vh = v_all[:, lo:hi]            # (tkv, d)

        # NT contraction: contract the last dims, no materialized k transpose.
        s = lax.dot_general(
            qh, kh,
            dimension_numbers=(((1,), (1,)), ((), ())),
            preferred_element_type=jnp.float32,
        )                               # (tq, tkv), f32

        m_prev = m_sc[h]                                    # (tq, 1)
        m_new = jnp.maximum(m_prev, s.max(axis=-1, keepdims=True))
        alpha = jnp.exp(m_prev - m_new)
        p = jnp.exp(s - m_new)

        l_sc[h] = alpha * l_sc[h] + p.sum(axis=-1, keepdims=True)
        acc_sc[h] = alpha * acc_sc[h] + jnp.dot(
            p.astype(v_all.dtype), vh, preferred_element_type=jnp.float32
        )
        m_sc[h] = m_new

    @pl.when(kv_idx == pl.num_programs(3) - 1)
    def _():
        outs = []
        for h in range(hp):
            l = l_sc[h]
            inv = pl.reciprocal(l, approx=True)
            inv = inv * (2.0 - l * inv)     # one Newton step -> full f32 accuracy
            outs.append(acc_sc[h] * inv)
        merged = outs[0] if hp == 1 else jnp.concatenate(outs, axis=-1)
        o_ref[...] = merged.astype(o_ref.dtype)


def flash_attention_fused_qkv(qkv, *, heads, dim_head, scale,
                              tq_pref=512, tkv_pref=256):
    """qkv: (B, N, 3*heads*dim_head) -> out: (B, N, heads*dim_head)."""
    B, N, three_inner = qkv.shape
    inner = heads * dim_head
    assert three_inner == 3 * inner

    # Pack the smallest head group whose lane width is a multiple of 128.
    hp = None
    for cand in range(1, heads + 1):
        if heads % cand == 0 and (cand * dim_head) % 128 == 0:
            hp = cand
            break
    if hp is None:
        # TODO(synk): head dims where no head group reaches a 128-lane multiple
        # (e.g. dim_head=48) would need a padded / per-head fallback path.
        raise NotImplementedError(
            f"unsupported head layout: heads={heads}, dim_head={dim_head}"
        )
    bw = hp * dim_head                        # lane width of one head group

    tq = _pick_tile(N, tq_pref, 8)
    tkv = _pick_tile(N, tkv_pref, 128)
    grid = (B, heads // hp, N // tq, N // tkv)

    k_off = heads // hp                       # column-block offset of k in qkv
    v_off = 2 * k_off                         # column-block offset of v in qkv

    q_spec = pl.BlockSpec((None, tq, bw), lambda b, g, qi, ki: (b, qi, g))
    k_spec = pl.BlockSpec((None, tkv, bw), lambda b, g, qi, ki: (b, ki, k_off + g))
    v_spec = pl.BlockSpec((None, tkv, bw), lambda b, g, qi, ki: (b, ki, v_off + g))
    o_spec = pl.BlockSpec((None, tq, bw), lambda b, g, qi, ki: (b, qi, g))

    kernel = functools.partial(
        _flash_attn_kernel, scale=scale, hp=hp, head_dim=dim_head
    )
    return pl.pallas_call(
        kernel,
        out_shape=jax.ShapeDtypeStruct((B, N, inner), qkv.dtype),
        grid_spec=pltpu.PrefetchScalarGridSpec(
            num_scalar_prefetch=0,
            grid=grid,
            in_specs=[q_spec, k_spec, v_spec],
            out_specs=o_spec,
            scratch_shapes=[
                pltpu.VMEM((hp, tq, 1), jnp.float32),        # running max
                pltpu.VMEM((hp, tq, 1), jnp.float32),        # running denom
                pltpu.VMEM((hp, tq, dim_head), jnp.float32), # output accumulator
            ],
        ),
        compiler_params=pltpu.CompilerParams(
            dimension_semantics=("parallel", "parallel", "parallel", "arbitrary"),
            vmem_limit_bytes=64 * 1024 * 1024,
        ),
    )(qkv, qkv, qkv)


# ----------------------------------------------------------------------------
# Full Attention.forward equivalent.
# ----------------------------------------------------------------------------
def attention_forward(x, w_qkv, w_out, b_out, *, heads, dim_head):
    B, N, D = x.shape
    inner = heads * dim_head
    scale = dim_head ** (-0.5)
    project_out = not (heads == 1 and dim_head == D)

    # to_qkv (Linear, no bias) — fused qkv buffer stays in (B, N, 3*inner).
    qkv = matmul_pallas(x.reshape(B * N, D), w_qkv).reshape(B, N, 3 * inner)

    # softmax(q k^T * scale) v, directly on the fused buffer; output already in
    # 'b n (h d)' layout — no XLA head split/merge transposes.
    out = flash_attention_fused_qkv(
        qkv, heads=heads, dim_head=dim_head, scale=scale
    )

    if project_out:
        # to_out = Linear(inner, dim) (+ Dropout(0.0) == identity), bias fused.
        out = matmul_pallas(out.reshape(B * N, inner), w_out, b_out)
        return out.reshape(B, N, D)
    return out


# ----------------------------------------------------------------------------
# Pure-JAX reference (mirrors the PyTorch module exactly).
# ----------------------------------------------------------------------------
def _reference_attention(x, w_qkv, w_out, b_out, heads, dim_head):
    B, N, D = x.shape
    inner = heads * dim_head
    hp = jax.lax.Precision.HIGHEST
    qkv = jnp.einsum("bnd,de->bne", x, w_qkv, precision=hp)
    q, k, v = jnp.split(qkv, 3, axis=-1)

    def sh(t):
        return t.reshape(B, N, heads, dim_head).transpose(0, 2, 1, 3)

    q, k, v = sh(q), sh(k), sh(v)
    dots = jnp.einsum("bhnd,bhmd->bhnm", q, k, precision=hp) * (dim_head ** -0.5)
    attn = jax.nn.softmax(dots, axis=-1)
    out = jnp.einsum("bhnm,bhmd->bhnd", attn, v, precision=hp)
    out = out.transpose(0, 2, 1, 3).reshape(B, N, inner)
    return jnp.einsum("bne,ed->bnd", out, w_out, precision=hp) + b_out


if __name__ == "__main__":
    # Small shapes consistent with the module defaults: dim=32, heads=8, dim_head=64
    B, N, D = 2, 8, 32
    heads, dim_head = 8, 64
    inner = heads * dim_head

    key = jax.random.PRNGKey(0)
    k1, k2, k3, k4 = jax.random.split(key, 4)
    x = jax.random.normal(k1, (B, N, D), dtype=jnp.float32)
    w_qkv = jax.random.normal(k2, (D, 3 * inner), dtype=jnp.float32) * 0.1
    w_out = jax.random.normal(k3, (inner, D), dtype=jnp.float32) * 0.05
    b_out = jax.random.normal(k4, (D,), dtype=jnp.float32) * 0.05

    run = jax.jit(
        functools.partial(attention_forward, heads=heads, dim_head=dim_head)
    )
    out = run(x, w_qkv, w_out, b_out)
    out = jax.block_until_ready(out)

    ref = _reference_attention(x, w_qkv, w_out, b_out, heads, dim_head)
    assert out.shape == (B, N, D)
    max_err = float(jnp.max(jnp.abs(out - ref)))
    assert jnp.allclose(out, ref, atol=2e-3, rtol=2e-3), (
        f"mismatch vs reference, max abs err {max_err}"
    )

    print("KERNEL_OK")
</pallas_src>

<mosaic_0001>
module attributes {stable_mosaic.version = 11 : i64} {
  func.func @_matmul_kernel(%arg0: i32, %arg1: i32, %arg2: i32, %arg3: memref<16x32xf32, #tpu.memory_space<vmem>>, %arg4: memref<32x512xf32, #tpu.memory_space<vmem>>, %arg5: memref<16x512xf32, #tpu.memory_space<vmem>>, %arg6: memref<16x512xf32, #tpu.memory_space<vmem>>) attributes {dimension_semantics = [#tpu.dimension_semantics<parallel>, #tpu.dimension_semantics<parallel>, #tpu.dimension_semantics<arbitrary>], iteration_bounds = array<i64: 1, 3, 1>, scalar_prefetch = 0 : i64, scratch_operands = 1 : i64, tpu.core_type = #tpu.core_type<tc>, window_params = [{transform_indices = @transform_0, window_bounds = array<i64: 16, 32>}, {transform_indices = @transform_1, window_bounds = array<i64: 32, 512>}, {transform_indices = @transform_2, window_bounds = array<i64: 16, 512>}]} {
    %c0_i32 = arith.constant 0 : i32
    %0 = arith.cmpi eq, %arg2, %c0_i32 : i32
    %1 = arith.extui %0 : i1 to i32
    %c0_i32_0 = arith.constant 0 : i32
    %2 = arith.cmpi ne, %1, %c0_i32_0 : i32
    scf.if %2 {
      %cst_10 = arith.constant 0.000000e+00 : f32
      %12 = vector.broadcast %cst_10 : f32 to vector<16x512xf32>
      %c0_11 = arith.constant 0 : index
      %c0_12 = arith.constant 0 : index
      %13 = vector.load %arg6[%c0_11, %c0_12] : memref<16x512xf32, #tpu.memory_space<vmem>>, vector<16x512xf32>
      tpu.vector_store %arg6[%c0_11, %c0_12], %12 {strides = array<i32>} : memref<16x512xf32, #tpu.memory_space<vmem>>, vector<16x512xf32>,
    } else {
    }
    %c0 = arith.constant 0 : index
    %c0_1 = arith.constant 0 : index
    %3 = vector.load %arg6[%c0, %c0_1] : memref<16x512xf32, #tpu.memory_space<vmem>>, vector<16x512xf32>
    %c0_2 = arith.constant 0 : index
    %c0_3 = arith.constant 0 : index
    %4 = vector.load %arg3[%c0_2, %c0_3] : memref<16x32xf32, #tpu.memory_space<vmem>>, vector<16x32xf32>
    %c0_4 = arith.constant 0 : index
    %c0_5 = arith.constant 0 : index
    %5 = vector.load %arg4[%c0_4, %c0_5] : memref<32x512xf32, #tpu.memory_space<vmem>>, vector<32x512xf32>
    %cst = arith.constant dense<0.000000e+00> : vector<16x512xf32>
    %6 = tpu.matmul %4, %5, %cst {dimension_numbers = #tpu.dot_dimension_numbers<[1], [0], [0], [1], [0, 0, 1, 1], [], []>} : vector<16x32xf32>, vector<32x512xf32>, vector<16x512xf32> -> vector<16x512xf32>
    %7 = arith.addf %3, %6 : vector<16x512xf32>
    %c0_6 = arith.constant 0 : index
    %c0_7 = arith.constant 0 : index
    %8 = vector.load %arg6[%c0_6, %c0_7] : memref<16x512xf32, #tpu.memory_space<vmem>>, vector<16x512xf32>
    tpu.vector_store %arg6[%c0_6, %c0_7], %7 {strides = array<i32>} : memref<16x512xf32, #tpu.memory_space<vmem>>, vector<16x512xf32>,
    %c0_i32_8 = arith.constant 0 : i32
    %9 = arith.cmpi eq, %arg2, %c0_i32_8 : i32
    %10 = arith.extui %9 : i1 to i32
    %c0_i32_9 = arith.constant 0 : i32
    %11 = arith.cmpi ne, %10, %c0_i32_9 : i32
    scf.if %11 {
      %c0_10 = arith.constant 0 : index
      %c0_11 = arith.constant 0 : index
      %12 = vector.load %arg6[%c0_10, %c0_11] : memref<16x512xf32, #tpu.memory_space<vmem>>, vector<16x512xf32>
      %c0_12 = arith.constant 0 : index
      %c0_13 = arith.constant 0 : index
      %13 = vector.load %arg5[%c0_12, %c0_13] : memref<16x512xf32, #tpu.memory_space<vmem>>, vector<16x512xf32>
      tpu.vector_store %arg5[%c0_12, %c0_13], %12 {strides = array<i32>} : memref<16x512xf32, #tpu.memory_space<vmem>>, vector<16x512xf32>,
    } else {
    }
    return
  }
  func.func @transform_0(%arg0: i32, %arg1: i32, %arg2: i32) -> (i32, i32) {
    %c0_i32 = arith.constant 0 : i32
    return %arg0, %arg2 : i32, i32
  }
  func.func @transform_1(%arg0: i32, %arg1: i32, %arg2: i32) -> (i32, i32) {
    %c0_i32 = arith.constant 0 : i32
    return %arg2, %arg1 : i32, i32
  }
  func.func @transform_2(%arg0: i32, %arg1: i32, %arg2: i32) -> (i32, i32) {
    %c0_i32 = arith.constant 0 : i32
    return %arg0, %arg1 : i32, i32
  }
}

module attributes {stable_mosaic.version = 11 : i64} {
  func.func @_matmul_bias_kernel(%arg0: i32, %arg1: i32, %arg2: i32, %arg3: memref<16x512xf32, #tpu.memory_space<vmem>>, %arg4: memref<512x32xf32, #tpu.memory_space<vmem>>, %arg5: memref<1x32xf32, #tpu.memory_space<vmem>>, %arg6: memref<16x32xf32, #tpu.memory_space<vmem>>, %arg7: memref<16x32xf32, #tpu.memory_space<vmem>>) attributes {dimension_semantics = [#tpu.dimension_semantics<parallel>, #tpu.dimension_semantics<parallel>, #tpu.dimension_semantics<arbitrary>], iteration_bounds = array<i64: 1, 1, 1>, scalar_prefetch = 0 : i64, scratch_operands = 1 : i64, tpu.core_type = #tpu.core_type<tc>, window_params = [{transform_indices = @transform_0, window_bounds = array<i64: 16, 512>}, {transform_indices = @transform_1, window_bounds = array<i64: 512, 32>}, {transform_indices = @transform_2, window_bounds = array<i64: 1, 32>}, {transform_indices = @transform_3, window_bounds = array<i64: 16, 32>}]} {
    %c0_i32 = arith.constant 0 : i32
    %0 = arith.cmpi eq, %arg2, %c0_i32 : i32
    %1 = arith.extui %0 : i1 to i32
    %c0_i32_0 = arith.constant 0 : i32
    %2 = arith.cmpi ne, %1, %c0_i32_0 : i32
    scf.if %2 {
      %cst_10 = arith.constant 0.000000e+00 : f32
      %12 = vector.broadcast %cst_10 : f32 to vector<16x32xf32>
      %c0_11 = arith.constant 0 : index
      %c0_12 = arith.constant 0 : index
      %13 = vector.load %arg7[%c0_11, %c0_12] : memref<16x32xf32, #tpu.memory_space<vmem>>, vector<16x32xf32>
      tpu.vector_store %arg7[%c0_11, %c0_12], %12 {strides = array<i32>} : memref<16x32xf32, #tpu.memory_space<vmem>>, vector<16x32xf32>,
    } else {
    }
    %c0 = arith.constant 0 : index
    %c0_1 = arith.constant 0 : index
    %3 = vector.load %arg7[%c0, %c0_1] : memref<16x32xf32, #tpu.memory_space<vmem>>, vector<16x32xf32>
    %c0_2 = arith.constant 0 : index
    %c0_3 = arith.constant 0 : index
    %4 = vector.load %arg3[%c0_2, %c0_3] : memref<16x512xf32, #tpu.memory_space<vmem>>, vector<16x512xf32>
    %c0_4 = arith.constant 0 : index
    %c0_5 = arith.constant 0 : index
    %5 = vector.load %arg4[%c0_4, %c0_5] : memref<512x32xf32, #tpu.memory_space<vmem>>, vector<512x32xf32>
    %cst = arith.constant dense<0.000000e+00> : vector<16x32xf32>
    %6 = tpu.matmul %4, %5, %cst {dimension_numbers = #tpu.dot_dimension_numbers<[1], [0], [0], [1], [0, 0, 1, 1], [], []>} : vector<16x512xf32>, vector<512x32xf32>, vector<16x32xf32> -> vector<16x32xf32>
    %7 = arith.addf %3, %6 : vector<16x32xf32>
    %c0_6 = arith.constant 0 : index
    %c0_7 = arith.constant 0 : index
    %8 = vector.load %arg7[%c0_6, %c0_7] : memref<16x32xf32, #tpu.memory_space<vmem>>, vector<16x32xf32>
    tpu.vector_store %arg7[%c0_6, %c0_7], %7 {strides = array<i32>} : memref<16x32xf32, #tpu.memory_space<vmem>>, vector<16x32xf32>,
    %c0_i32_8 = arith.constant 0 : i32
    %9 = arith.cmpi eq, %arg2, %c0_i32_8 : i32
    %10 = arith.extui %9 : i1 to i32
    %c0_i32_9 = arith.constant 0 : i32
    %11 = arith.cmpi ne, %10, %c0_i32_9 : i32
    scf.if %11 {
      %c0_10 = arith.constant 0 : index
      %c0_11 = arith.constant 0 : index
      %12 = vector.load %arg7[%c0_10, %c0_11] : memref<16x32xf32, #tpu.memory_space<vmem>>, vector<16x32xf32>
      %c0_12 = arith.constant 0 : index
      %c0_13 = arith.constant 0 : index
      %13 = vector.load %arg5[%c0_12, %c0_13] : memref<1x32xf32, #tpu.memory_space<vmem>>, vector<1x32xf32>
      %14 = vector.broadcast %13 : vector<1x32xf32> to vector<16x32xf32>
      %15 = arith.addf %12, %14 : vector<16x32xf32>
      %c0_14 = arith.constant 0 : index
      %c0_15 = arith.constant 0 : index
      %16 = vector.load %arg6[%c0_14, %c0_15] : memref<16x32xf32, #tpu.memory_space<vmem>>, vector<16x32xf32>
      tpu.vector_store %arg6[%c0_14, %c0_15], %15 {strides = array<i32>} : memref<16x32xf32, #tpu.memory_space<vmem>>, vector<16x32xf32>,
    } else {
    }
    return
  }
  func.func @transform_0(%arg0: i32, %arg1: i32, %arg2: i32) -> (i32, i32) {
    %c0_i32 = arith.constant 0 : i32
    return %arg0, %arg2 : i32, i32
  }
  func.func @transform_1(%arg0: i32, %arg1: i32, %arg2: i32) -> (i32, i32) {
    %c0_i32 = arith.constant 0 : i32
    return %arg2, %arg1 : i32, i32
  }
  func.func @transform_2(%arg0: i32, %arg1: i32, %arg2: i32) -> (i32, i32) {
    %c0_i32 = arith.constant 0 : i32
    %c0_i32_0 = arith.constant 0 : i32
    return %c0_i32, %arg1 : i32, i32
  }
  func.func @transform_3(%arg0: i32, %arg1: i32, %arg2: i32) -> (i32, i32) {
    %c0_i32 = arith.constant 0 : i32
    return %arg0, %arg1 : i32, i32
  }
}

module attributes {stable_mosaic.version = 11 : i64} {
  func.func @_flash_attn_kernel(%arg0: i32, %arg1: i32, %arg2: i32, %arg3: i32, %arg4: memref<1x8x128xf32, #tpu.memory_space<vmem>>, %arg5: memref<1x8x128xf32, #tpu.memory_space<vmem>>, %arg6: memref<1x8x128xf32, #tpu.memory_space<vmem>>, %arg7: memref<1x8x128xf32, #tpu.memory_space<vmem>>, %arg8: memref<2x8x1xf32, #tpu.memory_space<vmem>>, %arg9: memref<2x8x1xf32, #tpu.memory_space<vmem>>, %arg10: memref<2x8x64xf32, #tpu.memory_space<vmem>>) attributes {dimension_semantics = [#tpu.dimension_semantics<parallel>, #tpu.dimension_semantics<parallel>, #tpu.dimension_semantics<parallel>, #tpu.dimension_semantics<arbitrary>], iteration_bounds = array<i64: 2, 4, 1, 1>, scalar_prefetch = 0 : i64, scratch_operands = 3 : i64, tpu.core_type = #tpu.core_type<tc>, window_params = [{transform_indices = @transform_0, window_bounds = array<i64: 1, 8, 128>}, {transform_indices = @transform_1, window_bounds = array<i64: 1, 8, 128>}, {transform_indices = @transform_2, window_bounds = array<i64: 1, 8, 128>}, {transform_indices = @transform_3, window_bounds = array<i64: 1, 8, 128>}]} {
    %c0_i32 = arith.constant 0 : i32
    %0 = arith.cmpi eq, %arg3, %c0_i32 : i32
    %1 = arith.extui %0 : i1 to i32
    %c0_i32_0 = arith.constant 0 : i32
    %2 = arith.cmpi ne, %1, %c0_i32_0 : i32
    scf.if %2 {
      %cst_54 = arith.constant 0xFF800000 : f32
      %84 = vector.broadcast %cst_54 : f32 to vector<2x8x1xf32>
      %c0_55 = arith.constant 0 : index
      %c0_56 = arith.constant 0 : index
      %c0_57 = arith.constant 0 : index
      %85 = vector.load %arg8[%c0_55, %c0_56, %c0_57] : memref<2x8x1xf32, #tpu.memory_space<vmem>>, vector<2x8x1xf32>
      tpu.vector_store %arg8[%c0_55, %c0_56, %c0_57], %84 {strides = array<i32>} : memref<2x8x1xf32, #tpu.memory_space<vmem>>, vector<2x8x1xf32>,
      %cst_58 = arith.constant 0.000000e+00 : f32
      %86 = vector.broadcast %cst_58 : f32 to vector<2x8x1xf32>
      %c0_59 = arith.constant 0 : index
      %c0_60 = arith.constant 0 : index
      %c0_61 = arith.constant 0 : index
      %87 = vector.load %arg9[%c0_59, %c0_60, %c0_61] : memref<2x8x1xf32, #tpu.memory_space<vmem>>, vector<2x8x1xf32>
      tpu.vector_store %arg9[%c0_59, %c0_60, %c0_61], %86 {strides = array<i32>} : memref<2x8x1xf32, #tpu.memory_space<vmem>>, vector<2x8x1xf32>,
      %cst_62 = arith.constant 0.000000e+00 : f32
      %88 = vector.broadcast %cst_62 : f32 to vector<2x8x64xf32>
      %c0_63 = arith.constant 0 : index
      %c0_64 = arith.constant 0 : index
      %c0_65 = arith.constant 0 : index
      %89 = vector.load %arg10[%c0_63, %c0_64, %c0_65] : memref<2x8x64xf32, #tpu.memory_space<vmem>>, vector<2x8x64xf32>
      tpu.vector_store %arg10[%c0_63, %c0_64, %c0_65], %88 {strides = array<i32>} : memref<2x8x64xf32, #tpu.memory_space<vmem>>, vector<2x8x64xf32>,
    } else {
    }
    %c0 = arith.constant 0 : index
    %c0_1 = arith.constant 0 : index
    %c0_2 = arith.constant 0 : index
    %3 = vector.load %arg4[%c0, %c0_1, %c0_2] : memref<1x8x128xf32, #tpu.memory_space<vmem>>, vector<1x8x128xf32>
    %4 = vector.shape_cast %3 : vector<1x8x128xf32> to vector<8x128xf32>
    %cst = arith.constant 1.250000e-01 : f32
    %5 = vector.broadcast %cst : f32 to vector<8x128xf32>
    %6 = arith.mulf %4, %5 : vector<8x128xf32>
    %c0_3 = arith.constant 0 : index
    %c0_4 = arith.constant 0 : index
    %c0_5 = arith.constant 0 : index
    %7 = vector.load %arg5[%c0_3, %c0_4, %c0_5] : memref<1x8x128xf32, #tpu.memory_space<vmem>>, vector<1x8x128xf32>
    %8 = vector.shape_cast %7 : vector<1x8x128xf32> to vector<8x128xf32>
    %c0_6 = arith.constant 0 : index
    %c0_7 = arith.constant 0 : index
    %c0_8 = arith.constant 0 : index
    %9 = vector.load %arg6[%c0_6, %c0_7, %c0_8] : memref<1x8x128xf32, #tpu.memory_space<vmem>>, vector<1x8x128xf32>
    %10 = vector.shape_cast %9 : vector<1x8x128xf32> to vector<8x128xf32>
    %11 = vector.extract_strided_slice %6 {offsets = [0, 0], sizes = [8, 64], strides = [1, 1]} : vector<8x128xf32> to vector<8x64xf32>
    %12 = vector.extract_strided_slice %8 {offsets = [0, 0], sizes = [8, 64], strides = [1, 1]} : vector<8x128xf32> to vector<8x64xf32>
    %13 = vector.extract_strided_slice %10 {offsets = [0, 0], sizes = [8, 64], strides = [1, 1]} : vector<8x128xf32> to vector<8x64xf32>
    %cst_9 = arith.constant dense<0.000000e+00> : vector<8x8xf32>
    %14 = tpu.matmul %11, %12, %cst_9 {dimension_numbers = #tpu.dot_dimension_numbers<[1], [1], [0], [0], [0, 0, 1, 0], [], []>} : vector<8x64xf32>, vector<8x64xf32>, vector<8x8xf32> -> vector<8x8xf32>
    %c0_10 = arith.constant 0 : index
    %c0_11 = arith.constant 0 : index
    %c0_12 = arith.constant 0 : index
    %15 = vector.load %arg8[%c0_10, %c0_11, %c0_12] : memref<2x8x1xf32, #tpu.memory_space<vmem>>, vector<1x8x1xf32>
    %16 = vector.shape_cast %15 : vector<1x8x1xf32> to vector<8x1xf32>
    %cst_13 = arith.constant dense<0xFF800000> : vector<8xf32>
    %17 = vector.multi_reduction <maximumf>, %14, %cst_13 [1] : vector<8x8xf32> to vector<8xf32>
    %18 = vector.shape_cast %17 : vector<8xf32> to vector<8x1xf32>
    %19 = arith.maximumf %16, %18 : vector<8x1xf32>
    %20 = arith.subf %16, %19 : vector<8x1xf32>
    %21 = math.exp %20 : vector<8x1xf32>
    %22 = vector.broadcast %19 : vector<8x1xf32> to vector<8x8xf32>
    %23 = arith.subf %14, %22 : vector<8x8xf32>
    %24 = math.exp %23 : vector<8x8xf32>
    %c0_14 = arith.constant 0 : index
    %c0_15 = arith.constant 0 : index
    %c0_16 = arith.constant 0 : index
    %25 = vector.load %arg9[%c0_14, %c0_15, %c0_16] : memref<2x8x1xf32, #tpu.memory_space<vmem>>, vector<1x8x1xf32>
    %26 = vector.shape_cast %25 : vector<1x8x1xf32> to vector<8x1xf32>
    %27 = arith.mulf %21, %26 : vector<8x1xf32>
    %cst_17 = arith.constant dense<0.000000e+00> : vector<8xf32>
    %28 = vector.multi_reduction <add>, %24, %cst_17 [1] : vector<8x8xf32> to vector<8xf32>
    %29 = vector.shape_cast %28 : vector<8xf32> to vector<8x1xf32>
    %30 = arith.addf %27, %29 : vector<8x1xf32>
    %c0_18 = arith.constant 0 : index
    %c0_19 = arith.constant 0 : index
    %c0_20 = arith.constant 0 : index
    %31 = vector.load %arg9[%c0_18, %c0_19, %c0_20] : memref<2x8x1xf32, #tpu.memory_space<vmem>>, vector<1x8x1xf32>
    %32 = vector.shape_cast %31 : vector<1x8x1xf32> to vector<8x1xf32>
    %33 = vector.shape_cast %30 : vector<8x1xf32> to vector<1x8x1xf32>
    tpu.vector_store %arg9[%c0_18, %c0_19, %c0_20], %33 {strides = array<i32>} : memref<2x8x1xf32, #tpu.memory_space<vmem>>, vector<1x8x1xf32>,
    %c0_21 = arith.constant 0 : index
    %c0_22 = arith.constant 0 : index
    %c0_23 = arith.constant 0 : index
    %34 = vector.load %arg10[%c0_21, %c0_22, %c0_23] : memref<2x8x64xf32, #tpu.memory_space<vmem>>, vector<1x8x64xf32>
    %35 = vector.shape_cast %34 : vector<1x8x64xf32> to vector<8x64xf32>
    %36 = vector.broadcast %21 : vector<8x1xf32> to vector<8x64xf32>
    %37 = arith.mulf %36, %35 : vector<8x64xf32>
    %cst_24 = arith.constant dense<0.000000e+00> : vector<8x64xf32>
    %38 = tpu.matmul %24, %13, %cst_24 {dimension_numbers = #tpu.dot_dimension_numbers<[1], [0], [0], [1], [0, 0, 1, 1], [], []>} : vector<8x8xf32>, vector<8x64xf32>, vector<8x64xf32> -> vector<8x64xf32>
    %39 = arith.addf %37, %38 : vector<8x64xf32>
    %c0_25 = arith.constant 0 : index
    %c0_26 = arith.constant 0 : index
    %c0_27 = arith.constant 0 : index
    %40 = vector.load %arg10[%c0_25, %c0_26, %c0_27] : memref<2x8x64xf32, #tpu.memory_space<vmem>>, vector<1x8x64xf32>
    %41 = vector.shape_cast %40 : vector<1x8x64xf32> to vector<8x64xf32>
    %42 = vector.shape_cast %39 : vector<8x64xf32> to vector<1x8x64xf32>
    tpu.vector_store %arg10[%c0_25, %c0_26, %c0_27], %42 {strides = array<i32>} : memref<2x8x64xf32, #tpu.memory_space<vmem>>, vector<1x8x64xf32>,
    %c0_28 = arith.constant 0 : index
    %c0_29 = arith.constant 0 : index
    %c0_30 = arith.constant 0 : index
    %43 = vector.load %arg8[%c0_28, %c0_29, %c0_30] : memref<2x8x1xf32, #tpu.memory_space<vmem>>, vector<1x8x1xf32>
    %44 = vector.shape_cast %43 : vector<1x8x1xf32> to vector<8x1xf32>
    %45 = vector.shape_cast %19 : vector<8x1xf32> to vector<1x8x1xf32>
    tpu.vector_store %arg8[%c0_28, %c0_29, %c0_30], %45 {strides = array<i32>} : memref<2x8x1xf32, #tpu.memory_space<vmem>>, vector<1x8x1xf32>,
    %46 = vector.extract_strided_slice %6 {offsets = [0, 64], sizes = [8, 64], strides = [1, 1]} : vector<8x128xf32> to vector<8x64xf32>
    %47 = vector.extract_strided_slice %8 {offsets = [0, 64], sizes = [8, 64], strides = [1, 1]} : vector<8x128xf32> to vector<8x64xf32>
    %48 = vector.extract_strided_slice %10 {offsets = [0, 64], sizes = [8, 64], strides = [1, 1]} : vector<8x128xf32> to vector<8x64xf32>
    %cst_31 = arith.constant dense<0.000000e+00> : vector<8x8xf32>
    %49 = tpu.matmul %46, %47, %cst_31 {dimension_numbers = #tpu.dot_dimension_numbers<[1], [1], [0], [0], [0, 0, 1, 0], [], []>} : vector<8x64xf32>, vector<8x64xf32>, vector<8x8xf32> -> vector<8x8xf32>
    %c1 = arith.constant 1 : index
    %c0_32 = arith.constant 0 : index
    %c0_33 = arith.constant 0 : index
    %50 = vector.load %arg8[%c1, %c0_32, %c0_33] : memref<2x8x1xf32, #tpu.memory_space<vmem>>, vector<1x8x1xf32>
    %51 = vector.shape_cast %50 : vector<1x8x1xf32> to vector<8x1xf32>
    %cst_34 = arith.constant dense<0xFF800000> : vector<8xf32>
    %52 = vector.multi_reduction <maximumf>, %49, %cst_34 [1] : vector<8x8xf32> to vector<8xf32>
    %53 = vector.shape_cast %52 : vector<8xf32> to vector<8x1xf32>
    %54 = arith.maximumf %51, %53 : vector<8x1xf32>
    %55 = arith.subf %51, %54 : vector<8x1xf32>
    %56 = math.exp %55 : vector<8x1xf32>
    %57 = vector.broadcast %54 : vector<8x1xf32> to vector<8x8xf32>
    %58 = arith.subf %49, %57 : vector<8x8xf32>
    %59 = math.exp %58 : vector<8x8xf32>
    %c1_35 = arith.constant 1 : index
    %c0_36 = arith.constant 0 : index
    %c0_37 = arith.constant 0 : index
    %60 = vector.load %arg9[%c1_35, %c0_36, %c0_37] : memref<2x8x1xf32, #tpu.memory_space<vmem>>, vector<1x8x1xf32>
    %61 = vector.shape_cast %60 : vector<1x8x1xf32> to vector<8x1xf32>
    %62 = arith.mulf %56, %61 : vector<8x1xf32>
    %cst_38 = arith.constant dense<0.000000e+00> : vector<8xf32>
    %63 = vector.multi_reduction <add>, %59, %cst_38 [1] : vector<8x8xf32> to vector<8xf32>
    %64 = vector.shape_cast %63 : vector<8xf32> to vector<8x1xf32>
    %65 = arith.addf %62, %64 : vector<8x1xf32>
    %c1_39 = arith.constant 1 : index
    %c0_40 = arith.constant 0 : index
    %c0_41 = arith.constant 0 : index
    %66 = vector.load %arg9[%c1_39, %c0_40, %c0_41] : memref<2x8x1xf32, #tpu.memory_space<vmem>>, vector<1x8x1xf32>
    %67 = vector.shape_cast %66 : vector<1x8x1xf32> to vector<8x1xf32>
    %68 = vector.shape_cast %65 : vector<8x1xf32> to vector<1x8x1xf32>
    tpu.vector_store %arg9[%c1_39, %c0_40, %c0_41], %68 {strides = array<i32>} : memref<2x8x1xf32, #tpu.memory_space<vmem>>, vector<1x8x1xf32>,
    %c1_42 = arith.constant 1 : index
    %c0_43 = arith.constant 0 : index
    %c0_44 = arith.constant 0 : index
    %69 = vector.load %arg10[%c1_42, %c0_43, %c0_44] : memref<2x8x64xf32, #tpu.memory_space<vmem>>, vector<1x8x64xf32>
    %70 = vector.shape_cast %69 : vector<1x8x64xf32> to vector<8x64xf32>
    %71 = vector.broadcast %56 : vector<8x1xf32> to vector<8x64xf32>
    %72 = arith.mulf %71, %70 : vector<8x64xf32>
    %cst_45 = arith.constant dense<0.000000e+00> : vector<8x64xf32>
    %73 = tpu.matmul %59, %48, %cst_45 {dimension_numbers = #tpu.dot_dimension_numbers<[1], [0], [0], [1], [0, 0, 1, 1], [], []>} : vector<8x8xf32>, vector<8x64xf32>, vector<8x64xf32> -> vector<8x64xf32>
    %74 = arith.addf %72, %73 : vector<8x64xf32>
    %c1_46 = arith.constant 1 : index
    %c0_47 = arith.constant 0 : index
    %c0_48 = arith.constant 0 : index
    %75 = vector.load %arg10[%c1_46, %c0_47, %c0_48] : memref<2x8x64xf32, #tpu.memory_space<vmem>>, vector<1x8x64xf32>
    %76 = vector.shape_cast %75 : vector<1x8x64xf32> to vector<8x64xf32>
    %77 = vector.shape_cast %74 : vector<8x64xf32> to vector<1x8x64xf32>
    tpu.vector_store %arg10[%c1_46, %c0_47, %c0_48], %77 {strides = array<i32>} : memref<2x8x64xf32, #tpu.memory_space<vmem>>, vector<1x8x64xf32>,
    %c1_49 = arith.constant 1 : index
    %c0_50 = arith.constant 0 : index
    %c0_51 = arith.constant 0 : index
    %78 = vector.load %arg8[%c1_49, %c0_50, %c0_51] : memref<2x8x1xf32, #tpu.memory_space<vmem>>, vector<1x8x1xf32>
    %79 = vector.shape_cast %78 : vector<1x8x1xf32> to vector<8x1xf32>
    %80 = vector.shape_cast %54 : vector<8x1xf32> to vector<1x8x1xf32>
    tpu.vector_store %arg8[%c1_49, %c0_50, %c0_51], %80 {strides = array<i32>} : memref<2x8x1xf32, #tpu.memory_space<vmem>>, vector<1x8x1xf32>,
    %c0_i32_52 = arith.constant 0 : i32
    %81 = arith.cmpi eq, %arg3, %c0_i32_52 : i32
    %82 = arith.extui %81 : i1 to i32
    %c0_i32_53 = arith.constant 0 : i32
    %83 = arith.cmpi ne, %82, %c0_i32_53 : i32
    scf.if %83 {
      %c0_54 = arith.constant 0 : index
      %c0_55 = arith.constant 0 : index
      %c0_56 = arith.constant 0 : index
      %84 = vector.load %arg9[%c0_54, %c0_55, %c0_56] : memref<2x8x1xf32, #tpu.memory_space<vmem>>, vector<1x8x1xf32>
      %85 = vector.shape_cast %84 : vector<1x8x1xf32> to vector<8x1xf32>
      %86 = tpu.reciprocal %85 {approx = true} : vector<8x1xf32> -> vector<8x1xf32>
      %87 = arith.mulf %85, %86 : vector<8x1xf32>
      %cst_57 = arith.constant 2.000000e+00 : f32
      %88 = vector.broadcast %cst_57 : f32 to vector<8x1xf32>
      %89 = arith.subf %88, %87 : vector<8x1xf32>
      %90 = arith.mulf %86, %89 : vector<8x1xf32>
      %c0_58 = arith.constant 0 : index
      %c0_59 = arith.constant 0 : index
      %c0_60 = arith.constant 0 : index
      %91 = vector.load %arg10[%c0_58, %c0_59, %c0_60] : memref<2x8x64xf32, #tpu.memory_space<vmem>>, vector<1x8x64xf32>
      %92 = vector.shape_cast %91 : vector<1x8x64xf32> to vector<8x64xf32>
      %93 = vector.broadcast %90 : vector<8x1xf32> to vector<8x64xf32>
      %94 = arith.mulf %92, %93 : vector<8x64xf32>
      %c1_61 = arith.constant 1 : index
      %c0_62 = arith.constant 0 : index
      %c0_63 = arith.constant 0 : index
      %95 = vector.load %arg9[%c1_61, %c0_62, %c0_63] : memref<2x8x1xf32, #tpu.memory_space<vmem>>, vector<1x8x1xf32>
      %96 = vector.shape_cast %95 : vector<1x8x1xf32> to vector<8x1xf32>
      %97 = tpu.reciprocal %96 {approx = true} : vector<8x1xf32> -> vector<8x1xf32>
      %98 = arith.mulf %96, %97 : vector<8x1xf32>
      %cst_64 = arith.constant 2.000000e+00 : f32
      %99 = vector.broadcast %cst_64 : f32 to vector<8x1xf32>
      %100 = arith.subf %99, %98 : vector<8x1xf32>
      %101 = arith.mulf %97, %100 : vector<8x1xf32>
      %c1_65 = arith.constant 1 : index
      %c0_66 = arith.constant 0 : index
      %c0_67 = arith.constant 0 : index
      %102 = vector.load %arg10[%c1_65, %c0_66, %c0_67] : memref<2x8x64xf32, #tpu.memory_space<vmem>>, vector<1x8x64xf32>
      %103 = vector.shape_cast %102 : vector<1x8x64xf32> to vector<8x64xf32>
      %104 = vector.broadcast %101 : vector<8x1xf32> to vector<8x64xf32>
      %105 = arith.mulf %103, %104 : vector<8x64xf32>
      %106 = tpu.concatenate %94, %105 in 1 : vector<8x64xf32>, vector<8x64xf32> -> vector<8x128xf32>
      %c0_68 = arith.constant 0 : index
      %c0_69 = arith.constant 0 : index
      %c0_70 = arith.constant 0 : index
      %107 = vector.load %arg7[%c0_68, %c0_69, %c0_70] : memref<1x8x128xf32, #tpu.memory_space<vmem>>, vector<1x8x128xf32>
      %108 = vector.shape_cast %107 : vector<1x8x128xf32> to vector<8x128xf32>
      %109 = vector.shape_cast %106 : vector<8x128xf32> to vector<1x8x128xf32>
      tpu.vector_store %arg7[%c0_68, %c0_69, %c0_70], %109 {strides = array<i32>} : memref<1x8x128xf32, #tpu.memory_space<vmem>>, vector<1x8x128xf32>,
    } else {
    }
    return
  }
  func.func @transform_0(%arg0: i32, %arg1: i32, %arg2: i32, %arg3: i32) -> (i32, i32, i32) {
    %c0_i32 = arith.constant 0 : i32
    return %arg0, %arg2, %arg1 : i32, i32, i32
  }
  func.func @transform_1(%arg0: i32, %arg1: i32, %arg2: i32, %arg3: i32) -> (i32, i32, i32) {
    %c4_i32 = arith.constant 4 : i32
    %0 = arith.addi %c4_i32, %arg1 : i32
    %c0_i32 = arith.constant 0 : i32
    return %arg0, %arg3, %0 : i32, i32, i32
  }
  func.func @transform_2(%arg0: i32, %arg1: i32, %arg2: i32, %arg3: i32) -> (i32, i32, i32) {
    %c8_i32 = arith.constant 8 : i32
    %0 = arith.addi %c8_i32, %arg1 : i32
    %c0_i32 = arith.constant 0 : i32
    return %arg0, %arg3, %0 : i32, i32, i32
  }
  func.func @transform_3(%arg0: i32, %arg1: i32, %arg2: i32, %arg3: i32) -> (i32, i32, i32) {
    %c0_i32 = arith.constant 0 : i32
    return %arg0, %arg2, %arg1 : i32, i32, i32
  }
}

</mosaic_0001>

<bundles_post_ra>
// kernel: attention_forward.3
= control target key start
LH: loop header
LB: loop body
LE: loop exit
PB: predicated region body
PF: predicated region fallthrough
CT: control target
= control target key end

     0   :  { %7 = vsyncpa [#allocation4], 0  ;;  %s1100_s0 = inlined_call_operand.hbm [shape: f32[16,32], index: 0, kind: input, shape index: {}]   ;;  %s1101_s1 = inlined_call_operand.hbm [shape: f32[32,1536], index: 1, kind: input, shape index: {}]   ;;  %s1102_s2 = inlined_call_operand.hbm [shape: f32[16,1536], index: 2, kind: output, shape index: {}]  }
   0x1   :  { %8 = vsyncpa [#allocation7], 0 }
   0x2   :  { %10 = vsyncpa [#allocation7 + $0x1], 0 }
   0x3   :  { %11 = vsyncpa [#allocation5], 0 }
   0x4   :  { %13 = vsyncpa [#allocation5 + $0x1], 0  ;;  %s870_s9 = smov 0   ;;  %s872_s10 = smov 0  }
   0x5   :  { %s874_s11 = smov 0   ;;  %s876_s12 = smov 0  }
   0x6   :  { %s878_s13 = smov 0   ;;  %s880_s14 = smov 0  }
   0x7 LB: > { %s576_s15 = sadd.s32 4294967295, %s841_s14   ;;  %s577_s16 = sadd.s32 4294967294, %s841_s14   ;;  %s841_s14 = sphi %s880_s14, %s19_s14   ;;  %s837_s13 = sphi %s878_s13, %s1127_s13   ;;  %s833_s12 = sphi %s876_s12, %s1126_s12   ;;  %s829_s11 = sphi %s874_s11, %s1125_s11   ;;  %s825_s10 = sphi %s872_s10, %s1124_s10   ;;  %s821_s9 = sphi %s870_s9, %s1123_s9  }
   0x8   : > { %p82_p0 = scmp.ne.s32.totalorder %s829_s11, %s825_s10  ;;  %p83_p1 = scmp.eq.s32.totalorder %s841_s14, 0 }
   0x9   : > { %p88_p2 = scmp.ne.s32.totalorder %s825_s10, %s821_s9  ;;  %p907_p3 = scmp.eq.s32.totalorder %s576_s15, 0 }
   0xa   : > { %p911_p4 = por %p83_p1, %p82_p0  ;;  %p114_p5 = scmp.eq.s32.totalorder %s576_s15, 2 }
   0xb   : > { %s1109_s17 = scalar_select %p907_p3, 1, 0 }
   0xc   : > { %p917_p6 = por %p907_p3, %p88_p2  ;;  %p120_p7 = scmp.eq.s32.totalorder %s577_s16, 2 }
   0xd   : > { %p921_p8 = por %p114_p5, %p82_p0  ;;  %p578_p9 = scmp.ge.s32.totalorder %s841_s14, 1 }
   0xe   : > { %s1111_s19 = scalar_select %p917_p6, 1, 0 }
   0xf   : > { %s1112_s20 = scalar_select %p921_p8, 1, 0 }
  0x10   : > { %p926_p10 = por %p120_p7, %p88_p2  ;;  %p127_p11 = scmp.lt.s32.totalorder %s841_s14, 4 }
  0x11   : > { %s843_s23 = smov [#allocation3]   ;;  %p636_p0 = scmp.lt.s32.totalorder %s841_s14, 3 }
  0x12   : > { %s1113_s21 = scalar_select %p926_p10, 1, 0 }
  0x13   : > { %p931_p12 = pnand %p578_p9, %p127_p11  ;;  %s143_s24 = sshll.u32 %s843_s23, 4  ;;  %s144_s24 = int_to_ptr.vmem [resolvable:$true] %s143_s24 }
  0x14   : > { %p946_p2 = pnand %p636_p0, %p911_p4  ;;  %s34_s27 = sadd.s32 1, %s837_s13 }
  0x15   : > { %s1114_s22 = scalar_select %p931_p12, 1, 0 }
  0x16   : > { %p623_p13 = pneg %p931_p12  ;;  %s697_s30 = scalar_lea.hbm %s1100_s0, 256 }
  0x17   : > { %s1116_s26 = scalar_select %p946_p2, 1, 0 }
  0x18   : > { %p940_p1 = pnand %p623_p13, %p907_p3  ;;  %p698_p5 = scmp.ne.s32.totalorder %s1100_s0, %s697_s30 }
  0x19   : > { %p704_p4 = scmp.lt.u32.totalorder %s697_s30, %s1100_s0 }
  0x1a   : > { %p699_p7 = pneg %p940_p1 }
  0x1c   : > { %p700_p9 = pnand %p699_p7, %p698_p5 }
  0x1e   : > { %p701_p11 = pneg %p700_p9 }
  0x20   : > { %p706_p13 = pnand %p704_p4, %p701_p11 }
  0x22   : > { %709 = shalt.err (!%p706_p13)
}
  0x23   : > { %s710_s7 = scalar_lea.vmem %s144_s24, 256  ;;  %p718_p6 = scmp.lt.s32.totalorder %s144_s24, %s144_s24 }
  0x24   : > { %p711_p0 = scmp.ne.s32.totalorder %s144_s24, %s710_s7  ;;  %p719_p3 = scmp.lt.s32.totalorder %s710_s7, %s710_s7 }
  0x26   : > { %p713_p10 = pnand %p711_p0, %p699_p7  ;;  %p720_p12 = por %p719_p3, %p718_p6 }
  0x28   : > { %p714_p8 = pneg %p713_p10 }
  0x2a   : > { %p721_p2 = pnand %p720_p12, %p714_p8 }
  0x2c   : > { %724 = shalt.err (!%p721_p2)
}
  0x2d   : > { %s844_s8 = smov 128   ;;  %s845_s15 = smov 8  }
  0x2e   : > { %626 = dma.hbm_to_vmem [thread:$0]  (!%p940_p1), %s1100_s0, 256, %s144_s24, [#allocation4], %s844_s8, %s844_s8, %s845_s15  }
  0x2f   : > { %p36_p5 = scmp.ge.s32.totalorder %s34_s27, 3  ;;  %s75_s23 = sadd.s32 1, %s829_s11 }
  0x30   : > { %s157_s28 = sand.u32 1, %s829_s11   ;;  %s597_s3 = sshll.u32 %s837_s13, 9 }
  0x31   : > { %s1129_s27 = smov (%p36_p5, %s34_s27), 0  ;;  %s581_s29 = sshll.u32 %s157_s28, 7 }
  0x32   : > { %s71_s30 = ssub.s32 %s837_s13, %s1129_s27  ;;  %s977_s25 = scalar_lea.hbm %s1101_s1, %s597_s3 }
  0x33   : > { %p73_p3 = scmp.eq.s32.totalorder %s71_s30, 0  ;;  %s161_s24 = scalar_lea.vmem [#allocation6], %s581_s29 }
  0x34   : > { %s171_s6 = sshll.u32 %s161_s24, 4  ;;  %s984_s8 = scalar_lea.sflag [#allocation7], %s157_s28  ;;  %s982_s6 = int_to_ptr.vmem [resolvable:$true] %s171_s6 }
  0x35   : > { %s980_s7 = scalar_select %p73_p3, %s829_s11, %s75_s23  }
  0x36   : > { %s725_s15 = scalar_lea.hbm %s977_s25, 2048  ;;  %p1117_p8 = scmp.ne.s32.totalorder %s1116_s26, 0 }
  0x37   : > { %p726_p6 = scmp.ne.s32.totalorder %s977_s25, %s725_s15  ;;  %s730_s30 = scalar_lea.hbm %s1101_s1, 6144 }
  0x38   : > { %p727_p10 = pneg %p1117_p8  ;;  %p731_p2 = scmp.lt.u32.totalorder %s977_s25, %s1101_s1 }
  0x39   : > { %p732_p7 = scmp.lt.u32.totalorder %s730_s30, %s725_s15  ;;  %p734_p11 = scmp.lt.u32.totalorder %s725_s15, %s977_s25 }
  0x3a   : > { %p728_p12 = pnand %p727_p10, %p726_p6 }
  0x3b   : > { %p733_p9 = por %p732_p7, %p731_p2 }
  0x3c   : > { %p729_p1 = pneg %p728_p12 }
  0x3d   : > { %p735_p4 = por %p734_p11, %p733_p9 }
  0x3f   : > { %p736_p13 = pnand %p735_p4, %p729_p1 }
  0x41   : > { %739 = shalt.err (!%p736_p13)
}
  0x42   : > { %s740_s23 = scalar_lea.vmem %s982_s6, 2048  ;;  %s846_s28 = smov [#allocation6]  }
  0x43   : > { %p741_p0 = scmp.ne.s32.totalorder %s982_s6, %s740_s23  ;;  %s745_s4 = sshll.u32 %s846_s28, 4  ;;  %s746_s4 = int_to_ptr.vmem [resolvable:$false] %s745_s4 }
  0x44   : > { %s747_s5 = scalar_lea.vmem %s746_s4, 4096  ;;  %p748_p6 = scmp.lt.s32.totalorder %s982_s6, %s746_s4 }
  0x45   : > { %p743_p5 = pnand %p741_p0, %p727_p10  ;;  %p749_p12 = scmp.lt.s32.totalorder %s747_s5, %s740_s23 }
  0x47   : > { %p744_p3 = pneg %p743_p5  ;;  %p750_p2 = por %p749_p12, %p748_p6 }
  0x49   : > { %p751_p7 = pnand %p750_p2, %p744_p3 }
  0x4b   : > { %754 = shalt.err (!%p751_p7)
}
  0x4c   : > { %s847_s24 = smov 1536   ;;  %s848_s15 = smov 512  }
  0x4d   : > { %s849_s16 = smov 32   ;;  %p1118_p10 = scmp.ne.s32.totalorder %s1114_s22, 0 }
  0x4e   : > { %630 = dma.hbm_to_vmem [thread:$0]  (!%p1117_p8), %s977_s25, 2048, %s982_s6, %s984_s8, %s847_s24, %s848_s15, %s849_s16  }
  0x4f   : > { %183 = sbr.rel (%p1118_p10) target bundleno = 337 (0x151), region = 28  ;;  %p1119_p1 = scmp.ne.s32.totalorder (!%p1118_p10), %s1109_s17, 0 }
  0x56   : > { %808 = dma.done.wait (%p1119_p1), [#allocation4], 256  }
  0x57   : > { %810 = vsyncadd (%p1119_p1), [#allocation4], 4294967040  ;;  %s1019_s18 = sand.u32 1, %s825_s10   ;;  %p1120_p8 = scmp.ne.s32.totalorder %s1111_s19, 0 }
  0x58   : > { %s586_s30 = sshll.u32 %s1019_s18, 7  ;;  %s190_s29 = scalar_lea.sflag [#allocation7], %s1019_s18 }
  0x59   : > { %s1023_s3 = scalar_lea.vmem [#allocation6], %s586_s30 }
  0x5a   : > { %812 = dma.done.wait (%p1120_p8), %s190_s29, 2048  }
  0x5b   : > { %814 = vsyncadd (%p1120_p8), %s190_s29, 4294965248  ;;  %v850_v0 = vmov 0.0   ;;  %v242_v1 = vld [vmem:[%s1023_s3 + $0x8] sm:$0xff]  ;;  %v244_v3 = vld [vmem:[%s1023_s3 + $0x18] sm:$0xff]  ;;  %vm257_vm0 = vcmask 261120   ;;  %s587_s17 = sshll.u32 %s1019_s18, 6 }
  0x5c   : > { %328 = vmatprep.mubr.f32.mxu0 %v850_v0  ;;  %405 = vmatprep.mubr.f32.mxu1 %v850_v0  ;;  %v246_v2 = vld [vmem:[%s1023_s3 + $0x28] sm:$0xff]  ;;  %v248_v5 = vld [vmem:[%s1023_s3 + $0x38] sm:$0xff]  ;;  %v241_v6 = vld [vmem:[%s1023_s3] sm:$0xff]  ;;  %s213_s19 = scalar_lea.vmem [#allocation8], %s587_s17  ;;  %s598_s26 = sshll.u32 %s833_s12, 9 }
  0x5d   : > { %v599_v4 = vpack.c.bf16 %v246_v2, %v242_v1  ;;  %v245_v7 = vld [vmem:[%s1023_s3 + $0x20] sm:$0xff]  ;;  %v607_v8 = vpack.c.bf16 %v248_v5, %v244_v3  ;;  %v243_v10 = vld [vmem:[%s1023_s3 + $0x10] sm:$0xff]  ;;  %v250_v12 = vld [vmem:[%s1023_s3 + $0x48] sm:$0xff]  ;;  %s470_s22 = sshll.u32 %s213_s19, 4  ;;  %s1052_s8 = scalar_lea.hbm %s1102_s2, %s598_s26  ;;  %s1047_s22 = int_to_ptr.vmem [resolvable:$true] %s470_s22 }
  0x5e   : > { %v601_v9 = vpack.c.bf16 %v245_v7, %v241_v6  ;;  %v247_v11 = vld [vmem:[%s1023_s3 + $0x30] sm:$0xff]  ;;  %v254_v14 = vld [vmem:[%s1023_s3 + $0x68] sm:$0xff]  ;;  %v252_v15 = vld [vmem:[%s1023_s3 + $0x58] sm:$0xff]  ;;  %s454_s12 = scalar_lea.sflag [#allocation5], %s1019_s18  ;;  %s755_s23 = scalar_lea.vmem %s1047_s22, 1024 }
  0x5f   : > { %600 = vmatprep.subr.bf16.mxu0 %v599_v4  ;;  %v609_v13 = vpack.c.bf16 %v247_v11, %v243_v10  ;;  %v256_v16 = vld [vmem:[%s1023_s3 + $0x78] sm:$0xff]  ;;  %608 = vmatprep.subr.bf16.mxu1 %v607_v8  ;;  %v603_v17 = vpack.c.bf16 %v254_v14, %v250_v12  ;;  %v249_v19 = vld [vmem:[%s1023_s3 + $0x40] sm:$0xff]  ;;  %v251_v21 = vld [vmem:[%s1023_s3 + $0x50] sm:$0xff]  ;;  %p756_p9 = scmp.ne.s32.totalorder %s1047_s22, %s755_s23  ;;  %p1121_p11 = scmp.ne.s32.totalorder %s1112_s20, 0 }
  0x60   : > { %602 = vmatpush1.bf16.msra.mxu0 %v601_v9  ;;  %v611_v18 = vpack.c.bf16 %v256_v16, %v252_v15  ;;  %v253_v20 = vld [vmem:[%s1023_s3 + $0x60] sm:$0xff]  ;;  %v255_v23 = vld [vmem:[%s1023_s3 + $0x70] sm:$0xff]  ;;  %v240_v26 = vld [vmem:[#allocation3 + $0x8] sm:$0xff]  ;;  %s851_s28 = smov [#allocation8]  }
  0x61   : > { %610 = vmatpush1.bf16.msra.mxu1 %v609_v13  ;;  %v605_v22 = vpack.c.bf16 %v253_v20, %v249_v19  ;;  %604 = vmatprep.subr.bf16.mxu0 %v603_v17  ;;  %v613_v24 = vpack.c.bf16 %v255_v23, %v251_v21  ;;  %v239_v25 = vld [vmem:[#allocation3] sm:$0xff]  ;;  %p757_p4 = pnand %p756_p9, %p1121_p11  ;;  %s759_s4 = sshll.u32 %s851_s28, 4  ;;  %s760_s4 = int_to_ptr.vmem [resolvable:$false] %s759_s4 }
  0x62   : > { %612 = vmatprep.subr.bf16.mxu1 %v611_v18  ;;  %s761_s5 = scalar_lea.vmem %s760_s4, 2048  ;;  %p762_p0 = scmp.lt.s32.totalorder %s1047_s22, %s760_s4 }
  0x63   : > { %p758_p13 = pneg %p757_p4  ;;  %p763_p5 = scmp.lt.s32.totalorder %s761_s5, %s755_s23 }
  0x64   : > { %606 = vmatpush1.bf16.msra.mxu0 %v605_v22 }
  0x65   : > { %614 = vmatpush1.bf16.msra.mxu1 %v613_v24  ;;  %p764_p3 = por %p763_p5, %p762_p0 }
  0x67   : > { %588 = vmatmul.mubr.msk.f32.vlgmr.msra.gmra.mrb[0].mxu0 %vm257_vm0, %v239_v25  ;;  %p765_p6 = pnand %p764_p3, %p758_p13 }
  0x68   : > { %590 = vmatmul.mubr.msk.f32.vlgmr.msra.gmra.mrb[0].mxu1 %vm257_vm0, %v239_v25  ;;  %334 = vmatprep.mubr.f32.mxu0 %v850_v0 }
  0x69   : > { %411 = vmatprep.mubr.f32.mxu1 %v850_v0 }
  0x6b   : > { %589 = vmatmul.mubr.msk.f32.gmra.mrb[2].mxu0 %vm257_vm0, %v240_v26 }
  0x6c   : > { %591 = vmatmul.mubr.msk.f32.gmra.mrb[2].mxu1 %vm257_vm0, %v240_v26 }
 0x13a   : > { %v330_v27 = vpop.f32.mrb[0].mxu0 }
 0x13b   : > { %445 = vst [vmem:[%s213_s19] sm:$0xff] %v330_v27  ;;  %v407_v28 = vpop.f32.mrb[0].mxu1  ;;  %v332_v29 = vpop.f32.mrb[1].mxu0 }
 0x13c   : > { %447 = vst [vmem:[%s213_s19 + $0x10] sm:$0xff] %v407_v28  ;;  %446 = vst [vmem:[%s213_s19 + $0x8] sm:$0xff] %v332_v29  ;;  %v409_v30 = vpop.f32.mrb[1].mxu1 }
 0x13d   : > { %448 = vst [vmem:[%s213_s19 + $0x18] sm:$0xff] %v409_v30 }
 0x13e   : > { %v336_v31 = vpop.f32.mrb[2].mxu0 }
 0x13f   : > { %449 = vst [vmem:[%s213_s19 + $0x20] sm:$0xff] %v336_v31  ;;  %v413_v32 = vpop.f32.mrb[2].mxu1  ;;  %v338_v33 = vpop.f32.mrb[3].mxu0 }
 0x140   : > { %451 = vst [vmem:[%s213_s19 + $0x30] sm:$0xff] %v413_v32  ;;  %450 = vst [vmem:[%s213_s19 + $0x28] sm:$0xff] %v338_v33  ;;  %v415_v34 = vpop.f32.mrb[3].mxu1 }
 0x141   : > { %452 = vst [vmem:[%s213_s19 + $0x38] sm:$0xff] %v415_v34 }
 0x142   : > { %768 = shalt.err (!%p765_p6)
}
 0x143   : > { %s769_s24 = scalar_lea.hbm %s1052_s8, 1024  ;;  %s773_s30 = scalar_lea.hbm %s1102_s2, 3072 }
 0x144   : > { %p770_p12 = scmp.ne.s32.totalorder %s1052_s8, %s769_s24  ;;  %p774_p10 = scmp.lt.u32.totalorder %s1052_s8, %s1102_s2 }
 0x145   : > { %p775_p1 = scmp.lt.u32.totalorder %s773_s30, %s769_s24  ;;  %p777_p9 = scmp.lt.u32.totalorder %s769_s24, %s1052_s8 }
 0x146   : > { %p771_p2 = pnand %p770_p12, %p1121_p11 }
 0x147   : > { %p776_p8 = por %p775_p1, %p774_p10 }
 0x148   : > { %p772_p7 = pneg %p771_p2 }
 0x149   : > { %p778_p4 = por %p777_p9, %p776_p8 }
 0x14b   : > { %p779_p13 = pnand %p778_p4, %p772_p7 }
 0x14d   : > { %782 = shalt.err (!%p779_p13)
}
 0x14e   : > { %s852_s17 = smov 512   ;;  %s853_s19 = smov 1536  }
 0x14f   : > { %s854_s26 = smov 32  }
 0x150   : > { %621 = dma.vmem_to_hbm [thread:$0]  (%p1121_p11), %s1047_s22, 1024, %s1052_s8, %s454_s12, %s852_s17, %s853_s19, %s854_s26  }
 0x151 PF: > { %p638_p0 = scmp.ge.s32.totalorder %s841_s14, 2  ;;  %s485_s25 = sand.u32 1, %s821_s9  }
 0x152   : > { %p1122_p5 = scmp.ne.s32.totalorder %s1113_s21, 0  ;;  %s486_s6 = scalar_lea.sflag [#allocation5], %s485_s25 }
 0x154   : > { %p632_p3 = pnand %p638_p0, %p1122_p5 }
 0x156   : > { %816 = dma.done.wait (!%p632_p3), %s486_s6, 1024  }
 0x157   : > { %818 = vsyncadd (!%p632_p3), %s486_s6, 4294966272  ;;  %s19_s14 = sadd.s32 1, %s841_s14   ;;  %s1123_s9 = smov %s825_s10 }
 0x158   : > { %p16_p6 = scmp.ge.s32.totalorder %s19_s14, 5   ;;  %s1124_s10 = smov %s829_s11 }
 0x159   : > { %s1125_s11 = smov %s980_s7  ;;  %s1126_s12 = smov %s837_s13 }
 0x15a   : > { %s1127_s13 = smov %s1129_s27  ;;  %18 = sbr.rel (!%p16_p6) target bundleno = 7 (0x7), region = 87 }
 0x161   :  { %491 = vsyncpa [#allocation4], 1 }
 0x162   :  { %493 = vsyncpa [#allocation4 + $0x1], 1 }
 0x163   :  { %494 = vsyncpa [#allocation7], 1 }
 0x164   :  { %496 = vsyncpa [#allocation7 + $0x1], 1 }
 0x165   :  { %497 = vsyncpa [#allocation5], 1 }
 0x166   :  { %499 = vsyncpa [#allocation5 + $0x1], 1 }

// kernel: attention_forward.4
= control target key start
LH: loop header
LB: loop body
LE: loop exit
PB: predicated region body
PF: predicated region fallthrough
CT: control target
= control target key end

     0   :  { %s1839_s0 = inlined_call_operand.hbm [shape: f32[2,8,1536], index: 0, kind: input, shape index: {}, may-alias: {0,1,2}]   ;;  %s1840_s1 = inlined_call_operand.hbm [shape: f32[2,8,1536], index: 1, kind: input, shape index: {}, may-alias: {0,1,2}]   ;;  %s1841_s2 = inlined_call_operand.hbm [shape: f32[2,8,1536], index: 2, kind: input, shape index: {}, may-alias: {0,1,2}]   ;;  %s1842_s3 = inlined_call_operand.hbm [shape: f32[2,8,512], index: 3, kind: output, shape index: {}]  }
   0x1   :  { %1858 = sst [smem:[#allocation26_spill]] %s1840_s1 }
   0x2   :  { %1859 = sst [smem:[#allocation27_spill]] %s1842_s3 }
   0x3   :  { %8 = vsyncpa [#allocation6], 0 }
   0x4   :  { %10 = vsyncpa [#allocation6 + $0x1], 0 }
   0x5   :  { %11 = vsyncpa [#allocation9], 0 }
   0x6   :  { %13 = vsyncpa [#allocation9 + $0x1], 0 }
   0x7   :  { %14 = vsyncpa [#allocation7], 0 }
   0x8   :  { %16 = vsyncpa [#allocation7 + $0x1], 0  ;;  %s1397_s12 = smov 0   ;;  %s1399_s13 = smov 0  }
   0x9   :  { %s1401_s14 = smov 0   ;;  %s1403_s15 = smov 0  }
   0xa   :  { %s1405_s16 = smov 0   ;;  %s1407_s17 = smov 0  }
   0xb   :  { %s1409_s18 = smov 0   ;;  %s1411_s19 = smov 0  }
   0xc   :  { %s1413_s20 = smov 0   ;;  %s1415_s21 = smov 0  }
   0xd   :  { %s1417_s22 = smov 0   ;;  %s1419_s23 = smov 0  }
   0xe   :  { %s1421_s24 = smov 0   ;;  %s1423_s25 = smov 0  }
   0xf LB: > { %1860 = sst [smem:[#allocation16_spill]] %s1346_s20  ;;  %s1468_s26 = sadd.s32 4294967295, %s1366_s25   ;;  %s1366_s25 = sphi %s1423_s25, %s22_s25   ;;  %s1362_s24 = sphi %s1421_s24, %s1907_s24   ;;  %s1358_s23 = sphi %s1419_s23, %s1917_s23   ;;  %s1354_s22 = sphi %s1417_s22, %s1905_s22   ;;  %s1350_s21 = sphi %s1415_s21, %s1916_s21   ;;  %s1346_s20 = sphi %s1413_s20, %s1903_s20   ;;  %s1342_s19 = sphi %s1411_s19, %s1915_s19   ;;  %s1338_s18 = sphi %s1409_s18, %s1914_s18   ;;  %s1334_s17 = sphi %s1407_s17, %s1913_s17   ;;  %s1330_s16 = sphi %s1405_s16, %s1912_s16   ;;  %s1326_s15 = sphi %s1403_s15, %s1911_s15   ;;  %s1322_s14 = sphi %s1401_s14, %s1910_s14   ;;  %s1318_s13 = sphi %s1399_s13, %s1909_s13   ;;  %s1314_s12 = sphi %s1397_s12, %s1908_s12  }
  0x10   : > { %1861 = sst [smem:[#allocation17_spill]] %s1350_s21  ;;  %s44_s27 = sadd.s32 1, %s1358_s23 }
  0x11   : > { %1862 = sst [smem:[#allocation18_spill]] %s1354_s22  ;;  %p46_p0 = scmp.ge.s32.totalorder %s44_s27, 4 }
  0x12   : > { %1863 = sst [smem:[#allocation19_spill]] %s1358_s23  ;;  %s48_s28 = sadd.s32 1, %s1362_s24 }
  0x13   : > { %1864 = sst [smem:[#allocation20_spill]] %s1362_s24  ;;  %p1849_p1 = scmp.eq.s32.totalorder %s1366_s25, 0 }
  0x14   : > { %p1848_p2 = scmp.eq.s32.totalorder %s1468_s26, 0  ;;  %s1919_s27 = smov (%p46_p0, %s44_s27), 0 }
  0x15   : > { %1865 = sst [smem:[#allocation21_spill]] %s1919_s27  ;;  %s1921_s28 = smov (!%p46_p0, %s48_s28), %s1362_s24 }
  0x16   : > { %s82_s29 = sadd.s32 4, %s1358_s23  ;;  %s83_s30 = sadd.s32 4, %s1919_s27 }
  0x17   : > { %p50_p3 = scmp.ge.s32.totalorder %s1921_s28, 2  ;;  %s87_s4 = ssub.s32 %s82_s29, %s83_s30 }
  0x18   : > { %s91_s5 = sadd.s32 1, %s1334_s17  ;;  %p98_p4 = scmp.ne.s32.totalorder %s1334_s17, %s1330_s16 }
  0x19   : > { %s1923_s28 = smov (%p50_p3, %s1921_s28), 0  ;;  %p104_p6 = scmp.ne.s32.totalorder %s1330_s16, %s1326_s15 }
  0x1a   : > { %1866 = sst [smem:[#allocation22_spill]] %s1923_s28  ;;  %p1486_p5 = por %p98_p4, %p1849_p1 }
  0x1b   : > { %s1494_s7 = ssub.s32 %s1362_s24, %s1923_s28  ;;  %s114_s8 = sadd.s32 8, %s1358_s23 }
  0x1c   : > { %s88_s9 = sor.u32 %s87_s4, %s1494_s7  ;;  %p1500_p7 = por %p104_p6, %p1848_p2 }
  0x1d   : > { %p89_p8 = scmp.eq.s32.totalorder %s88_s9, 0  ;;  %s115_s11 = sadd.s32 8, %s1919_s27 }
  0x1e   : > { %s1868_s10 = scalar_select %p1500_p7, 1, 0 }
  0x1f   : > { %s119_s29 = ssub.s32 %s114_s8, %s115_s11  ;;  %p1847_p9 = scmp.lt.s32.totalorder %s1366_s25, 8 }
  0x20   : > { %1869 = sst [smem:[#allocation23_spill]] %s1868_s10  ;;  %s120_s15 = sor.u32 %s119_s29, %s1494_s7 }
  0x21   : > { %s1506_s30 = scalar_select %p89_p8, %s1334_s17, %s91_s5  }
  0x22   : > { %p1510_p10 = scmp.eq.s32.totalorder %s120_s15, 0  ;;  %s964_s4 = smul.u32 12, %s1362_s24 }
  0x23   : > { %1870 = sst [smem:[#allocation24_spill]] %s1506_s30  ;;  %s212_s3 = sand.u32 1, %s1366_s25  }
  0x24   : > { %s214_s21 = sand.u32 1, %s1334_s17   ;;  %s201_s22 = sadd.s32 %s1358_s23, %s964_s4 }
  0x25   : > { %s1518_s10 = sshll.u32 %s201_s22, 7  ;;  %s916_s8 = sshll.u32 %s214_s21, 3 }
  0x26   : > { %s1872_s1 = sld [smem:[#allocation26_spill]]  ;;  %s216_s29 = scalar_lea.vmem [#allocation8], %s916_s8 }
  0x27   : > { %s228_s15 = sshll.u32 %s216_s29, 4  ;;  %p1532_p11 = pnand %p1847_p9, %p1486_p5  ;;  %s1526_s15 = int_to_ptr.vmem [resolvable:$true] %s228_s15 }
  0x28   : > { %s1538_s21 = scalar_lea.sflag [#allocation9], %s212_s3 }
  0x29   : > { %p1122_p3 = pneg %p1532_p11 }
  0x2c   : > { %s806_s5 = scalar_lea.hbm %s1872_s1, %s1518_s10  ;;  %s1125_s9 = scalar_lea.hbm %s1872_s1, 3072 }
  0x2d   : > { %s1524_s30 = scalar_lea.hbm %s806_s5, 512  ;;  %s1150_s4 = scalar_lea.hbm %s806_s5, 640 }
  0x2e   : > { %p1121_p0 = scmp.ne.s32.totalorder %s1524_s30, %s1150_s4  ;;  %p1126_p5 = scmp.lt.u32.totalorder %s1524_s30, %s1872_s1 }
  0x2f   : > { %p1127_p8 = scmp.lt.u32.totalorder %s1125_s9, %s1150_s4  ;;  %p1129_p2 = scmp.lt.u32.totalorder %s1150_s4, %s1524_s30 }
  0x30   : > { %p1123_p4 = pnand %p1122_p3, %p1121_p0 }
  0x31   : > { %p1128_p9 = por %p1127_p8, %p1126_p5 }
  0x32   : > { %p1124_p6 = pneg %p1123_p4 }
  0x33   : > { %p1130_p1 = por %p1129_p2, %p1128_p9 }
  0x35   : > { %p1131_p12 = pnand %p1130_p1, %p1124_p6 }
  0x37   : > { %1134 = shalt.err (!%p1131_p12)
}
  0x38   : > { %s1135_s3 = scalar_lea.vmem %s1526_s15, 128  ;;  %s1368_s5 = smov [#allocation8]  }
  0x39   : > { %p1136_p0 = scmp.ne.s32.totalorder %s1526_s15, %s1135_s3  ;;  %s1140_s6 = sshll.u32 %s1368_s5, 4  ;;  %s1141_s6 = int_to_ptr.vmem [resolvable:$false] %s1140_s6 }
  0x3a   : > { %s1142_s8 = scalar_lea.vmem %s1141_s6, 256  ;;  %p1143_p7 = scmp.lt.s32.totalorder %s1526_s15, %s1141_s6 }
  0x3b   : > { %p1138_p4 = pnand %p1136_p0, %p1122_p3  ;;  %p1144_p5 = scmp.lt.s32.totalorder %s1142_s8, %s1135_s3 }
  0x3d   : > { %p1139_p13 = pneg %p1138_p4  ;;  %p1145_p8 = por %p1144_p5, %p1143_p7 }
  0x3f   : > { %p1146_p2 = pnand %p1145_p8, %p1139_p13 }
  0x41   : > { %1149 = shalt.err (!%p1146_p2)
}
  0x42   : > { %979 = dma.hbm_to_vmem [thread:$0]  (!%p1532_p11), %s1524_s30, 128, %s1526_s15, %s1538_s21  }
  0x43   : > { %p1874_p1 = scmp.lt.s32.totalorder %s1366_s25, 9  ;;  %p1875_p7 = scmp.ge.s32.totalorder %s1366_s25, 1 }
  0x44   : > { %s911_s4 = sadd.s32 4294967294, %s1366_s25   ;;  %s55_s9 = ssub.s32 %s1358_s23, %s1919_s27 }
  0x45   : > { %p1569_p9 = pnand %p1875_p7, %p1874_p1  ;;  %s56_s11 = sor.u32 %s55_s9, %s1494_s7 }
  0x46   : > { %s59_s29 = sadd.s32 1, %s1346_s20  ;;  %p57_p12 = scmp.eq.s32.totalorder %s56_s11, 0 }
  0x47   : > { %s1876_s22 = scalar_select %p1569_p9, 1, 0 }
  0x48   : > { %p66_p13 = scmp.ne.s32.totalorder %s1346_s20, %s1342_s19  ;;  %p72_p3 = scmp.ne.s32.totalorder %s1342_s19, %s1338_s18 }
  0x49   : > { %p164_p6 = scmp.eq.s32.totalorder %s1468_s26, 7  ;;  %p1878_p0 = scmp.eq.s32.totalorder %s1366_s25, 0 }
  0x4a   : > { %s1584_s3 = scalar_select %p57_p12, %s1346_s20, %s59_s29  }
  0x4b   : > { %p68_p11 = por %p1878_p0, %p66_p13  ;;  %p1879_p4 = scmp.eq.s32.totalorder %s1468_s26, 0 }
  0x4c   : > { %1877 = sst [smem:[#allocation25_spill]] %s1584_s3  ;;  %p1594_p8 = por %p164_p6, %p66_p13 }
  0x4d   : > { %p1590_p5 = por %p1879_p4, %p72_p3  ;;  %p170_p2 = scmp.eq.s32.totalorder %s911_s4, 7 }
  0x4e   : > { %s1881_s15 = scalar_select %p1594_p8, 1, 0 }
  0x4f   : > { %s1880_s30 = scalar_select %p1590_p5, 1, 0 }
  0x50   : > { %s190_s7 = sand.u32 1, %s1346_s20   ;;  %s1603_s8 = scalar_lea.hbm %s1839_s0, %s1518_s10 }
  0x51   : > { %p1605_p1 = por %p170_p2, %p72_p3  ;;  %s914_s11 = sshll.u32 %s190_s7, 3 }
  0x52   : > { %p1883_p7 = scmp.lt.s32.totalorder %s1366_s25, 8  ;;  %s194_s4 = scalar_lea.vmem [#allocation5], %s914_s11 }
  0x53   : > { %s1882_s9 = scalar_select %p1605_p1, 1, 0 }
  0x54   : > { %p1611_p12 = pnand %p1883_p7, %p68_p11  ;;  %s205_s5 = sshll.u32 %s194_s4, 4  ;;  %s1615_s5 = int_to_ptr.vmem [resolvable:$true] %s205_s5 }
  0x55   : > { %s191_s6 = scalar_lea.sflag [#allocation6], %s190_s7  ;;  %s1151_s1 = scalar_lea.hbm %s1603_s8, 128 }
  0x56   : > { %p1152_p13 = scmp.ne.s32.totalorder %s1603_s8, %s1151_s1  ;;  %p1153_p3 = pneg %p1611_p12 }
  0x57   : > { %s1156_s23 = scalar_lea.hbm %s1839_s0, 3072  ;;  %p1157_p11 = scmp.lt.u32.totalorder %s1603_s8, %s1839_s0 }
  0x58   : > { %p1154_p6 = pnand %p1153_p3, %p1152_p13  ;;  %p1158_p4 = scmp.lt.u32.totalorder %s1156_s23, %s1151_s1 }
  0x59   : > { %p1160_p7 = scmp.lt.u32.totalorder %s1151_s1, %s1603_s8 }
  0x5a   : > { %p1155_p0 = pneg %p1154_p6  ;;  %p1159_p2 = por %p1158_p4, %p1157_p11 }
  0x5c   : > { %p1161_p1 = por %p1160_p7, %p1159_p2 }
  0x5e   : > { %p1162_p8 = pnand %p1161_p1, %p1155_p0 }
  0x60   : > { %1165 = shalt.err (!%p1162_p8)
}
  0x61   : > { %s1166_s7 = scalar_lea.vmem %s1615_s5, 128  ;;  %s1369_s24 = smov [#allocation5]  }
  0x62   : > { %p1167_p13 = scmp.ne.s32.totalorder %s1615_s5, %s1166_s7  ;;  %s1171_s27 = sshll.u32 %s1369_s24, 4  ;;  %s1172_s27 = int_to_ptr.vmem [resolvable:$false] %s1171_s27 }
  0x63   : > { %s1173_s20 = scalar_lea.vmem %s1172_s27, 256  ;;  %p1174_p9 = scmp.lt.s32.totalorder %s1615_s5, %s1172_s27 }
  0x64   : > { %p1169_p6 = pnand %p1167_p13, %p1153_p3  ;;  %p1175_p11 = scmp.lt.s32.totalorder %s1173_s20, %s1166_s7 }
  0x66   : > { %p1170_p5 = pneg %p1169_p6  ;;  %p1176_p4 = por %p1175_p11, %p1174_p9 }
  0x68   : > { %p1177_p2 = pnand %p1176_p4, %p1170_p5 }
  0x6a   : > { %1180 = shalt.err (!%p1177_p2)
}
  0x6b   : > { %976 = dma.hbm_to_vmem [thread:$0]  (!%p1611_p12), %s1603_s8, 128, %s1615_s5, %s191_s6  }
  0x6c   : > { %s123_s1 = sadd.s32 1, %s1322_s14  ;;  %p130_p9 = scmp.ne.s32.totalorder %s1322_s14, %s1318_s13 }
  0x6d   : > { %s1648_s23 = scalar_select %p1510_p10, %s1322_s14, %s123_s1  }
  0x6e   : > { %p1885_p5 = scmp.eq.s32.totalorder %s1366_s25, 0  ;;  %p136_p1 = scmp.ne.s32.totalorder %s1318_s13, %s1314_s12 }
  0x6f   : > { %s237_s3 = sand.u32 1, %s1322_s14   ;;  %s816_s4 = scalar_lea.hbm %s1841_s2, %s1518_s10 }
  0x70   : > { %p132_p8 = por %p130_p9, %p1885_p5  ;;  %p1886_p3 = scmp.eq.s32.totalorder %s1468_s26, 0 }
  0x71   : > { %s918_s24 = sshll.u32 %s237_s3, 3  ;;  %s1665_s8 = scalar_lea.hbm %s816_s4, 1024 }
  0x72   : > { %p1661_p0 = por %p136_p1, %p1886_p3  ;;  %s239_s28 = scalar_lea.vmem [#allocation10], %s918_s24 }
  0x73   : > { %s251_s5 = sshll.u32 %s239_s28, 4  ;;  %p1888_p10 = scmp.lt.s32.totalorder %s1366_s25, 8  ;;  %s252_s5 = int_to_ptr.vmem [resolvable:$true] %s251_s5 }
  0x74   : > { %s1887_s7 = scalar_select %p1661_p0, 1, 0 }
  0x75   : > { %p1669_p12 = pnand %p1888_p10, %p132_p8  ;;  %s1211_s10 = scalar_lea.hbm %s816_s4, 1152 }
  0x76   : > { %p1182_p7 = scmp.ne.s32.totalorder %s1665_s8, %s1211_s10  ;;  %s1186_s20 = scalar_lea.hbm %s1841_s2, 3072 }
  0x77   : > { %p1183_p13 = pneg %p1669_p12  ;;  %p1187_p4 = scmp.lt.u32.totalorder %s1665_s8, %s1841_s2 }
  0x78   : > { %p1188_p2 = scmp.lt.u32.totalorder %s1186_s20, %s1211_s10  ;;  %p1190_p5 = scmp.lt.u32.totalorder %s1211_s10, %s1665_s8 }
  0x79   : > { %p1184_p6 = pnand %p1183_p13, %p1182_p7 }
  0x7a   : > { %p1189_p9 = por %p1188_p2, %p1187_p4 }
  0x7b   : > { %p1185_p11 = pneg %p1184_p6 }
  0x7c   : > { %p1191_p8 = por %p1190_p5, %p1189_p9 }
  0x7e   : > { %p1192_p1 = pnand %p1191_p8, %p1185_p11 }
  0x80   : > { %1195 = shalt.err (!%p1192_p1)
}
  0x81   : > { %s1196_s11 = scalar_lea.vmem %s252_s5, 128  ;;  %s1370_s29 = smov [#allocation10]  }
  0x82   : > { %p1197_p3 = scmp.ne.s32.totalorder %s252_s5, %s1196_s11  ;;  %s1201_s4 = sshll.u32 %s1370_s29, 4  ;;  %s1202_s4 = int_to_ptr.vmem [resolvable:$false] %s1201_s4 }
  0x83   : > { %s1203_s24 = scalar_lea.vmem %s1202_s4, 256  ;;  %p1204_p6 = scmp.lt.s32.totalorder %s252_s5, %s1202_s4 }
  0x84   : > { %p1199_p10 = pnand %p1197_p3, %p1183_p13  ;;  %p1205_p0 = scmp.lt.s32.totalorder %s1203_s24, %s1196_s11 }
  0x86   : > { %p1200_p7 = pneg %p1199_p10  ;;  %p1206_p2 = por %p1205_p0, %p1204_p6 }
  0x88   : > { %p1207_p4 = pnand %p1206_p2, %p1200_p7 }
  0x8a   : > { %1210 = shalt.err (!%p1207_p4)
}
  0x8b   : > { %982 = dma.hbm_to_vmem [thread:$0]  (!%p1669_p12), %s1665_s8, 128, %s252_s5, %s1538_s21  }
  0x8c   : > { %p1890_p11 = scmp.ne.s32.totalorder %s1876_s22, 0 }
  0x8d   : > { %s1697_s28 = sand.u32 (!%p1890_p11), 1, %s1342_s19   ;;  %p1891_p0 = scmp.ne.s32.totalorder (!%p1890_p11), %s1880_s30, 0 }
  0x8e   : > { %260 = sbr.rel (%p1890_p11) target bundleno = 1603 (0x643), region = 32  ;;  %s921_s10 = sshll.u32 (!%p1890_p11), %s1697_s28, 3 }
  0x8f   : > { %s263_s6 = scalar_lea.sflag (!%p1890_p11), [#allocation6], %s1697_s28  ;;  %s266_s27 = scalar_lea.vmem (!%p1890_p11), [#allocation5], %s921_s10 }
  0x95   : > { %1297 = dma.done.wait (%p1891_p0), %s263_s6, 128  }
  0x96   : > { %1299 = vsyncadd (%p1891_p0), %s263_s6, 4294967168  ;;  %s1892_s21 = sld [smem:[#allocation23_spill]]  ;;  %s271_s22 = sand.u32 1, %s1468_s26  }
  0x97   : > { %s273_s8 = sand.u32 1, %s1330_s16   ;;  %s272_s12 = scalar_lea.sflag [#allocation9], %s271_s22 }
  0x98   : > { %s922_s5 = sshll.u32 %s273_s8, 3 }
  0x99   : > { %s275_s20 = scalar_lea.vmem [#allocation8], %s922_s5 }
  0x9c   : > { %p1893_p12 = scmp.ne.s32.totalorder %s1892_s21, 0 }
  0x9e   : > { %1301 = dma.done.wait (%p1893_p12), %s272_s12, 128  }
  0x9f   : > { %1303 = vsyncadd (%p1893_p12), %s272_s12, 4294967168  ;;  %s282_s1 = sand.u32 1, %s1318_s13   ;;  %p1894_p13 = scmp.ne.s32.totalorder %s1887_s7, 0 }
  0xa0   : > { %s1714_s3 = sshll.u32 %s282_s1, 3 }
  0xa1   : > { %s284_s30 = scalar_lea.vmem [#allocation10], %s1714_s3 }
  0xa2   : > { %1305 = dma.done.wait (%p1894_p13), %s272_s12, 128  }
  0xa3   : > { %1307 = vsyncadd (%p1894_p13), %s272_s12, 4294967168  ;;  %vm328_vm0 = vcmask 523264   ;;  %v1371_v0 = vmov 0.0   ;;  %vm1372_vm1 = vmmov 0   ;;  %v333_v1 = vld [vmem:[%s275_s20] sm:$0xff]  ;;  %v331_v2 = vld [vmem:[%s266_s27] sm:$0xff] }
  0xa4   : > { %944 = vmatprep.subr.mxu0 %v1371_v0  ;;  %329 = vst.msk [vmem:[#allocation4] sm:$0xff] %vm328_vm0, %v1371_v0  ;;  %330 = vst.msk [vmem:[#allocation4 + $0x8] sm:$0xff] %vm328_vm0, %v1371_v0  ;;  %946 = vmatprep.mubr.msk.f32.mxu0 %vm1372_vm1, %v1371_v0  ;;  %v332_v3 = vmul.f32 0.125, %v331_v2  ;;  %vm323_vm2 = vcmask 7168   ;;  %v1373_v4 = vmov -inf   ;;  %vm413_vm3 = vcmask 64512  }
  0xa5   : > { %949 = vmatprep.subr.mxu1 %v1371_v0  ;;  %951 = vmatprep.mubr.msk.f32.mxu1 %vm1372_vm1, %v1371_v0  ;;  %324 = vst.msk [vmem:[#allocation2] sm:$0xff] %vm323_vm2, %v1373_v4  ;;  %325 = vst.msk [vmem:[#allocation2 + $0x8] sm:$0xff] %vm323_vm2, %v1373_v4  ;;  %v1374_v8 = vmov 0   ;;  %s1375_s26 = smov 64   ;;  %v334_v13 = vld [vmem:[%s284_s30] sm:$0xff]  ;;  %s1895_s7 = sld [smem:[#allocation18_spill]] }
  0xa6   : > { %945 = vmatpush3.xpose.msk.msra.mxu0 %vm328_vm0, %v333_v1  ;;  %326 = vst.msk [vmem:[#allocation3] sm:$0xff] %vm323_vm2, %v1371_v0  ;;  %327 = vst.msk [vmem:[#allocation3 + $0x8] sm:$0xff] %vm323_vm2, %v1371_v0  ;;  %1106 = vset.pattern.permute.xlu0 %v1374_v8  ;;  %s1896_s11 = sld [smem:[#allocation17_spill]]  ;;  %s316_s6 = scalar_lea.vmem [#allocation11], %s921_s10 }
  0xa7   : > { %959 = vmatprep.subr.mxu0 %v1371_v0  ;;  %1107 = vset.pattern.permute.xlu1 %v1374_v8  ;;  %s762_s27 = sshll.u32 %s316_s6, 4  ;;  %s1897_s8 = sld [smem:[#allocation27_spill]]  ;;  %s1762_s27 = int_to_ptr.vmem [resolvable:$true] %s762_s27 }
  0xa8   : > { %522 = vrot.lane.b32.xlu1 %v333_v1, %s1375_s26  ;;  %950 = vmatpush3.msra.mxu1 %v334_v13  ;;  %s745_s12 = scalar_lea.sflag [#allocation7], %s1697_s28  ;;  %s1212_s20 = scalar_lea.vmem %s1762_s27, 128 }
  0xa9   : > { %947 = vmatmul.mubr.msk.f32.vlgmr.msra.gmra.mrb[0].mxu0 %vm328_vm0, %v332_v3  ;;  %954 = vmatprep.subr.mxu1 %v1371_v0  ;;  %p1213_p9 = scmp.ne.s32.totalorder %s1762_s27, %s1212_s20  ;;  %p1898_p5 = scmp.ne.s32.totalorder %s1881_s15, 0 }
  0xaa   : > { %961 = vmatprep.mubr.msk.f32.mxu0 %vm1372_vm1, %v1371_v0  ;;  %s1376_s10 = smov [#allocation11]  }
  0xab   : > { %v437_v54 = vld [vmem:[#allocation4] sm:$0xff]  ;;  %v624_v63 = vld [vmem:[#allocation4 + $0x8] sm:$0xff]  ;;  %s932_s29 = sshll.u32 %s1895_s7, 2  ;;  %p1214_p8 = pnand %p1213_p9, %p1898_p5 }
  0xac   : > { %520 = vrot.lane.b32.xlu1 %v332_v3, %s1375_s26  ;;  %v412_v9 = vld [vmem:[#allocation2] sm:$0xff]  ;;  %v599_v25 = vld [vmem:[#allocation2 + $0x8] sm:$0xff]  ;;  %s758_s4 = sadd.s32 %s1896_s11, %s932_s29  ;;  %s1216_s1 = sshll.u32 %s1376_s10, 4  ;;  %s1217_s1 = int_to_ptr.vmem [resolvable:$false] %s1216_s1 }
  0xad   : > { %v429_v40 = vld [vmem:[#allocation3] sm:$0xff]  ;;  %v616_v49 = vld [vmem:[#allocation3 + $0x8] sm:$0xff]  ;;  %s933_s24 = sshll.u32 %s758_s4, 7  ;;  %p1215_p1 = pneg %p1214_p8 }
  0xae   : > { %s1760_s5 = scalar_lea.hbm %s1897_s8, %s933_s24  ;;  %s1218_s3 = scalar_lea.vmem %s1217_s1, 256 }
  0xaf   : > { %p1219_p3 = scmp.lt.s32.totalorder %s1762_s27, %s1217_s1  ;;  %p1220_p10 = scmp.lt.s32.totalorder %s1218_s3, %s1212_s20 }
  0xb1   : > { %p1221_p7 = por %p1220_p10, %p1219_p3 }
  0xb3   : > { %p1222_p6 = pnand %p1221_p7, %p1215_p1 }
 0x11a   : > { %v523_v17 = vpop.permute.xlu1 %522 }
 0x11e   : > { %v521_v19 = vpop.permute.xlu1 %520 }
 0x17c   : > { %v408_v5 = vpop.f32.mrb[0].mxu0 }
 0x17d   : > { %v948_v6 = vpop.f32.mrb[1].mxu0  ;;  %v414_v7 = vsel %vm413_vm3, %v408_v5, -inf }
 0x17e   : > { %415 = vmax.xlane.f32.xlu0 %v414_v7 }
 0x20b   : > { %v416_v10 = vpop.xlane.xlu0 %415 }
 0x20c   : > { %v417_v11 = vmax.f32 %v412_v9, %v416_v10 }
 0x20e   : > { %v418_v12 = vsub.f32 %v412_v9, %v417_v11  ;;  %519 = vst.msk [vmem:[#allocation2] sm:$0xff] %vm323_vm2, %v417_v11  ;;  %423 = vperm.xlu0 %1106, %v417_v11  }
 0x210   : > { %v419_v37 = vmul.f32 1.442695, %v418_v12 }
 0x212   : > { %632 = vrot.lane.b32.xlu0 %v334_v13, %s1375_s26 }
 0x28d   : > { %v424_v14 = vpop.permute.xlu0 %423 }
 0x28e   : > { %v426_v15 = vsub.f32 %v408_v5, %v424_v14 }
 0x290   : > { %v427_v16 = vmul.f32 1.442695, %v426_v15 }
 0x291   : > { %v633_v29 = vpop.permute.xlu0 %632 }
 0x292   : > { %1108 = vpow2.f32 %v427_v16  ;;  %960 = vmatpush3.msra.mxu0 %v633_v29 }
 0x29c   : > { %v1109_v18 = vpop.eup %1108 }
 0x29d   : > { %952 = vmatmul.mubr.msk.f32.vlgmr.msra.gmra.mrb[0].mxu1 %vm413_vm3, %v1109_v18  ;;  %v431_v30 = vsel %vm413_vm3, %v1109_v18, 0.0 }
 0x29e   : > { %955 = vmatpush3.xpose.msk.msra.mxu1 %vm328_vm0, %v523_v17  ;;  %956 = vmatprep.mubr.msk.f32.mxu1 %vm1372_vm1, %v1371_v0 }
 0x2a1   : > { %957 = vmatmul.mubr.msk.f32.vlgmr.msra.gmra.mrb[2].mxu1 %vm328_vm0, %v521_v19 }
 0x370   : > { %v513_v20 = vpop.f32.mrb[0].mxu1 }
 0x371   : > { %v953_v21 = vpop.f32.mrb[1].mxu1 }
 0x374   : > { %v594_v22 = vpop.f32.mrb[2].mxu1 }
 0x375   : > { %v958_v23 = vpop.f32.mrb[3].mxu1  ;;  %v600_v24 = vsel %vm413_vm3, %v594_v22, -inf }
 0x376   : > { %601 = vmax.xlane.f32.xlu1 %v600_v24 }
 0x403   : > { %v602_v26 = vpop.xlane.xlu1 %601 }
 0x404   : > { %v603_v27 = vmax.f32 %v599_v25, %v602_v26 }
 0x406   : > { %v604_v28 = vsub.f32 %v599_v25, %v603_v27  ;;  %710 = vst.msk [vmem:[#allocation2 + $0x8] sm:$0xff] %vm323_vm2, %v603_v27  ;;  %609 = vperm.xlu1 %1107, %v603_v27  }
 0x408   : > { %v605_v36 = vmul.f32 1.442695, %v604_v28 }
 0x42a   : > { %432 = vadd.xlane.f32.xlu1 %v431_v30 }
 0x485   : > { %v610_v31 = vpop.permute.xlu1 %609 }
 0x486   : > { %v612_v32 = vsub.f32 %v594_v22, %v610_v31 }
 0x488   : > { %v613_v33 = vmul.f32 1.442695, %v612_v32 }
 0x48a   : > { %1110 = vpow2.f32 %v613_v33 }
 0x48b   : > { %1112 = vpow2.f32 %v605_v36 }
 0x48c   : > { %1114 = vpow2.f32 %v419_v37 }
 0x494   : > { %v1111_v34 = vpop.eup %1110 }
 0x495   : > { %962 = vmatmul.mubr.msk.f32.vlgmr.msra.gmra.mrb[2].mxu0 %vm413_vm3, %v1111_v34  ;;  %v618_v35 = vsel %vm413_vm3, %v1111_v34, 0.0  ;;  %v1113_v38 = vpop.eup %1112 }
 0x496   : > { %619 = vadd.xlane.f32.xlu0 %v618_v35  ;;  %v1115_v39 = vpop.eup %1114  ;;  %v617_v50 = vmul.f32 %v1113_v38, %v616_v49 }
 0x497   : > { %v430_v41 = vmul.f32 %v1115_v39, %v429_v40 }
 0x4ac   : > { %627 = vperm.xlu0 %1106, %v1113_v38  }
 0x4b0   : > { %440 = vperm.xlu0 %1106, %v1115_v39  }
 0x4b7   : > { %v433_v42 = vpop.xlane.xlu1 %432 }
 0x4b8   : > { %v434_v43 = vadd.f32 %v433_v42, %v430_v41 }
 0x4ba   : > { %436 = vst.msk [vmem:[#allocation3] sm:$0xff] %vm323_vm2, %v434_v43 }
 0x4c1   : > { %v714_v44 = vld [vmem:[#allocation3] sm:$0xff] }
 0x4c2   : > { %1116 = vrcp.f32 %v714_v44 }
 0x4cc   : > { %v1117_v45 = vpop.eup %1116 }
 0x4cd   : > { %v716_v46 = vmul.f32 %v1117_v45, %v714_v44 }
 0x4cf   : > { %v717_v47 = vsub.f32 2.0, %v716_v46 }
 0x4d1   : > { %v718_v48 = vmul.f32 %v1117_v45, %v717_v47 }
 0x4d3   : > { %722 = vperm.xlu0 %1106, %v718_v48  }
 0x523   : > { %v620_v51 = vpop.xlane.xlu0 %619 }
 0x524   : > { %v621_v52 = vadd.f32 %v620_v51, %v617_v50 }
 0x526   : > { %622 = vst.msk [vmem:[#allocation3 + $0x8] sm:$0xff] %vm323_vm2, %v621_v52 }
 0x52b   : > { %v628_v53 = vpop.permute.xlu0 %627 }
 0x52c   : > { %v630_v0 = vmul.f32 %v628_v53, %v624_v63 }
 0x52d   : > { %v726_v55 = vld [vmem:[#allocation3 + $0x8] sm:$0xff] }
 0x52e   : > { %1118 = vrcp.f32 %v726_v55 }
 0x52f   : > { %v441_v56 = vpop.permute.xlu0 %440 }
 0x530   : > { %v443_v57 = vmul.f32 %v441_v56, %v437_v54 }
 0x532   : > { %v517_v58 = vadd.f32 %v513_v20, %v443_v57 }
 0x534   : > { %518 = vst.msk [vmem:[#allocation4] sm:$0xff] %vm328_vm0, %v517_v58 }
 0x538   : > { %v1119_v59 = vpop.eup %1118 }
 0x539   : > { %v728_v60 = vmul.f32 %v1119_v59, %v726_v55 }
 0x53b   : > { %v729_v61 = vsub.f32 2.0, %v728_v60  ;;  %v719_v8 = vld [vmem:[#allocation4] sm:$0xff] }
 0x53d   : > { %v730_v62 = vmul.f32 %v1119_v59, %v729_v61 }
 0x53f   : > { %734 = vperm.xlu1 %1107, %v730_v62  }
 0x552   : > { %v723_v7 = vpop.permute.xlu0 %722 }
 0x553   : > { %v725_v9 = vmul.f32 %v723_v7, %v719_v8 }
 0x568   : > { %v704_v1 = vpop.f32.mrb[2].mxu0 }
 0x569   : > { %v708_v2 = vadd.f32 %v704_v1, %v630_v0  ;;  %v963_v3 = vpop.f32.mrb[3].mxu0 }
 0x56b   : > { %709 = vst.msk [vmem:[#allocation4 + $0x8] sm:$0xff] %vm328_vm0, %v708_v2 }
 0x572   : > { %v731_v5 = vld [vmem:[#allocation4 + $0x8] sm:$0xff] }
 0x5be   : > { %v735_v4 = vpop.permute.xlu1 %734 }
 0x5bf   : > { %v737_v6 = vmul.f32 %v735_v4, %v731_v5 }
 0x5c1   : > { %739 = vrot.lane.b32.xlu0 %v737_v6, %s1375_s26 }
 0x633   : > { %v740_v10 = vpop.permute.xlu0 %739 }
 0x634   : > { %v742_v11 = vsel %vm328_vm0, %v725_v9, %v740_v10 }
 0x635   : > { %743 = vst [vmem:[%s316_s6] sm:$0xff] %v742_v11 }
 0x636   : > { %1225 = shalt.err (!%p1222_p6)
}
 0x637   : > { %s1226_s28 = scalar_lea.hbm %s1760_s5, 128  ;;  %s1230_s7 = scalar_lea.hbm %s1897_s8, 1024 }
 0x638   : > { %p1227_p2 = scmp.ne.s32.totalorder %s1760_s5, %s1226_s28  ;;  %p1231_p0 = scmp.lt.u32.totalorder %s1760_s5, %s1897_s8 }
 0x639   : > { %p1232_p12 = scmp.lt.u32.totalorder %s1230_s7, %s1226_s28  ;;  %p1234_p9 = scmp.lt.u32.totalorder %s1226_s28, %s1760_s5 }
 0x63a   : > { %p1228_p4 = pnand %p1227_p2, %p1898_p5 }
 0x63b   : > { %p1233_p13 = por %p1232_p12, %p1231_p0 }
 0x63c   : > { %p1229_p11 = pneg %p1228_p4 }
 0x63d   : > { %p1235_p8 = por %p1234_p9, %p1233_p13 }
 0x63f   : > { %p1236_p1 = pnand %p1235_p8, %p1229_p11 }
 0x641   : > { %1239 = shalt.err (!%p1236_p1)
}
 0x642   : > { %971 = dma.vmem_to_hbm [thread:$0]  (%p1898_p5), %s1762_s27, 128, %s1760_s5, %s745_s12  }
 0x643 PF: > { %p988_p3 = scmp.ge.s32.totalorder %s1366_s25, 2  ;;  %s774_s4 = sand.u32 1, %s1338_s18  }
 0x644   : > { %p1899_p10 = scmp.ne.s32.totalorder %s1882_s9, 0  ;;  %s775_s24 = scalar_lea.sflag [#allocation7], %s774_s4 }
 0x646   : > { %p984_p7 = pnand %p988_p3, %p1899_p10 }
 0x648   : > { %1309 = dma.done.wait (!%p984_p7), %s775_s24, 128  }
 0x649   : > { %1311 = vsyncadd (!%p984_p7), %s775_s24, 4294967168  ;;  %s22_s25 = sadd.s32 1, %s1366_s25   ;;  %s1901_s27 = sld [smem:[#allocation24_spill]] }
 0x64a   : > { %p1792_p6 = scmp.ge.s32.totalorder %s22_s25, 10   ;;  %s1902_s21 = sld [smem:[#allocation16_spill]] }
 0x64b   : > { %s1903_s20 = sld [smem:[#allocation25_spill]]  ;;  %s1904_s9 = sld [smem:[#allocation19_spill]] }
 0x64c   : > { %s1905_s22 = sld [smem:[#allocation20_spill]]  ;;  %s1906_s5 = sld [smem:[#allocation21_spill]] }
 0x64d   : > { %s1907_s24 = sld [smem:[#allocation22_spill]]  ;;  %s1908_s12 = smov %s1318_s13 }
 0x64e   : > { %s1909_s13 = smov %s1322_s14  ;;  %s1910_s14 = smov %s1648_s23 }
 0x64f   : > { %s1911_s15 = smov %s1330_s16  ;;  %s1912_s16 = smov %s1334_s17 }
 0x650   : > { %s1913_s17 = smov %s1901_s27  ;;  %s1914_s18 = smov %s1342_s19 }
 0x651   : > { %s1915_s19 = smov %s1902_s21  ;;  %s1916_s21 = smov %s1904_s9 }
 0x652   : > { %s1917_s23 = smov %s1906_s5  ;;  %21 = sbr.rel (!%p1792_p6) target bundleno = 15 (0xf), region = 112 }
 0x659   :  { %780 = vsyncpa [#allocation6], 1 }
 0x65a   :  { %782 = vsyncpa [#allocation6 + $0x1], 1 }
 0x65b   :  { %783 = vsyncpa [#allocation9], 1 }
 0x65c   :  { %785 = vsyncpa [#allocation9 + $0x1], 1 }
 0x65d   :  { %786 = vsyncpa [#allocation7], 1 }
 0x65e   :  { %788 = vsyncpa [#allocation7 + $0x1], 1 }

// kernel: attention_forward.5
= control target key start
LH: loop header
LB: loop body
LE: loop exit
PB: predicated region body
PF: predicated region fallthrough
CT: control target
= control target key end

     0   :  { %8 = vsyncpa [#allocation4], 0  ;;  %s657_s0 = inlined_call_operand.hbm [shape: f32[16,512], index: 0, kind: input, shape index: {}]   ;;  %s658_s1 = inlined_call_operand.hbm [shape: f32[512,32], index: 1, kind: input, shape index: {}]   ;;  %s659_s2 = inlined_call_operand.hbm [shape: f32[1,32], index: 2, kind: input, shape index: {}]   ;;  %s660_s3 = inlined_call_operand.hbm [shape: f32[16,32], index: 3, kind: output, shape index: {}]  }
   0x1   :  { %9 = vsyncpa [#allocation7], 0 }
   0x2   :  { %10 = vsyncpa [#allocation5], 0  ;;  %s568_s12 = smov [#allocation6]   ;;  %s474_s16 = scalar_lea.hbm %s658_s1, 8192 }
   0x3   :  { %s28_s13 = sshll.u32 %s568_s12, 4  ;;  %p475_p0 = scmp.ne.s32.totalorder %s658_s1, %s474_s16  ;;  %s29_s13 = int_to_ptr.vmem [resolvable:$true] %s28_s13 }
   0x4   :  { %p478_p1 = scmp.lt.u32.totalorder %s474_s16, %s658_s1 }
   0x6   :  { %p480_p2 = pnand %p478_p1, %p475_p0 }
   0x8   :  { %483 = shalt.err (!%p480_p2)
}
   0x9   :  { %s484_s21 = scalar_lea.vmem %s29_s13, 8192  ;;  %p489_p4 = scmp.lt.s32.totalorder %s29_s13, %s29_s13 }
   0xa   :  { %p485_p3 = scmp.ne.s32.totalorder %s29_s13, %s484_s21  ;;  %p490_p5 = scmp.lt.s32.totalorder %s484_s21, %s484_s21 }
   0xc   :  { %p491_p6 = por %p490_p5, %p489_p4 }
   0xe   :  { %p492_p7 = pnand %p491_p6, %p485_p3 }
  0x10   :  { %495 = shalt.err (!%p492_p7)
}
  0x11   :  { %s569_s22 = smov 128   ;;  %s570_s23 = smov 8  }
  0x12   :  { %34 = dma.hbm_to_vmem [thread:$0]  %s658_s1, 8192, %s29_s13, [#allocation7], %s569_s22, %s569_s22, %s570_s23  }
  0x13   :  { %s571_s26 = smov [#allocation3]   ;;  %s496_s30 = scalar_lea.hbm %s657_s0, 1024 }
  0x14   :  { %s16_s27 = sshll.u32 %s571_s26, 4  ;;  %p497_p8 = scmp.ne.s32.totalorder %s657_s0, %s496_s30  ;;  %s17_s27 = int_to_ptr.vmem [resolvable:$true] %s16_s27 }
  0x15   :  { %p500_p9 = scmp.lt.u32.totalorder %s496_s30, %s657_s0 }
  0x17   :  { %p502_p10 = pnand %p500_p9, %p497_p8 }
  0x19   :  { %505 = shalt.err (!%p502_p10)
}
  0x1a   :  { %s506_s8 = scalar_lea.vmem %s17_s27, 1024  ;;  %p511_p12 = scmp.lt.s32.totalorder %s17_s27, %s17_s27 }
  0x1b   :  { %p507_p11 = scmp.ne.s32.totalorder %s17_s27, %s506_s8  ;;  %p512_p13 = scmp.lt.s32.totalorder %s506_s8, %s506_s8 }
  0x1d   :  { %p513_p0 = por %p512_p13, %p511_p12 }
  0x1f   :  { %p514_p1 = pnand %p513_p0, %p507_p11 }
  0x21   :  { %517 = shalt.err (!%p514_p1)
}
  0x22   :  { %s572_s1 = smov 512   ;;  %s573_s9 = smov 32  }
  0x23   :  { %22 = dma.hbm_to_vmem [thread:$0]  %s657_s0, 1024, %s17_s27, [#allocation4], %s572_s1, %s572_s1, %s573_s9  }
  0x24   :  { %s574_s12 = smov [#allocation8]   ;;  %s518_s16 = scalar_lea.hbm %s659_s2, 16 }
  0x25   :  { %s41_s13 = sshll.u32 %s574_s12, 4  ;;  %p519_p2 = scmp.ne.s32.totalorder %s659_s2, %s518_s16  ;;  %s42_s13 = int_to_ptr.vmem [resolvable:$true] %s41_s13 }
  0x26   :  { %p522_p3 = scmp.lt.u32.totalorder %s518_s16, %s659_s2 }
  0x28   :  { %p524_p4 = pnand %p522_p3, %p519_p2 }
  0x2a   :  { %527 = shalt.err (!%p524_p4)
}
  0x2b   :  { %s528_s21 = scalar_lea.vmem %s42_s13, 16  ;;  %s532_s0 = scalar_lea.vmem %s42_s13, 32 }
  0x2c   :  { %p529_p5 = scmp.ne.s32.totalorder %s42_s13, %s528_s21  ;;  %p533_p6 = scmp.lt.s32.totalorder %s42_s13, %s42_s13 }
  0x2d   :  { %p534_p7 = scmp.lt.s32.totalorder %s532_s0, %s528_s21 }
  0x2f   :  { %p535_p8 = por %p534_p7, %p533_p6 }
  0x31   :  { %p536_p9 = pnand %p535_p8, %p529_p5 }
  0x33   :  { %539 = shalt.err (!%p536_p9)
}
  0x34   :  { %44 = dma.hbm_to_vmem [thread:$0]  %s659_s2, 16, %s42_s13, [#allocation7]  }
  0x35   :  { %562 = dma.done.wait [#allocation4], 1024  }
  0x36   :  { %563 = vsyncadd [#allocation4], 4294966272 }
  0x37   :  { %564 = dma.done.wait [#allocation7], 8208  }
  0x38   :  { %565 = vsyncadd [#allocation7], 4294959088  ;;  %v87_v0 = vld [vmem:[#allocation6 + $0x80] sm:$0xff]  ;;  %v88_v1 = vld [vmem:[#allocation6 + $0x88] sm:$0xff]  ;;  %vm58_vm0 = vcmask 261120   ;;  %s576_s2 = smov [#allocation9]  }
  0x39   :  { %v119_v2 = vld [vmem:[#allocation6 + $0x180] sm:$0xff]  ;;  %v401_v3 = vpack.c.bf16 %v88_v1, %v87_v0  ;;  %v120_v4 = vld [vmem:[#allocation6 + $0x188] sm:$0xff]  ;;  %v89_v11 = vld [vmem:[#allocation6 + $0x90] sm:$0xff]  ;;  %s311_s26 = sshll.u32 %s576_s2, 4  ;;  %s312_s26 = int_to_ptr.vmem [resolvable:$true] %s311_s26 }
  0x3a   :  { %v71_v5 = vld [vmem:[#allocation6] sm:$0xff]  ;;  %v72_v6 = vld [vmem:[#allocation6 + $0x8] sm:$0xff]  ;;  %v433_v7 = vpack.c.bf16 %v120_v4, %v119_v2  ;;  %v90_v13 = vld [vmem:[#allocation6 + $0x98] sm:$0xff]  ;;  %s540_s27 = scalar_lea.vmem %s312_s26, 256  ;;  %p545_p11 = scmp.lt.s32.totalorder %s312_s26, %s312_s26 }
  0x3b   :  { %v403_v8 = vpack.c.bf16 %v72_v6, %v71_v5  ;;  %v103_v9 = vld [vmem:[#allocation6 + $0x100] sm:$0xff]  ;;  %v104_v10 = vld [vmem:[#allocation6 + $0x108] sm:$0xff]  ;;  %402 = vmatprep.subr.bf16.mxu0 %v401_v3  ;;  %v121_v14 = vld [vmem:[#allocation6 + $0x190] sm:$0xff]  ;;  %v405_v16 = vpack.c.bf16 %v90_v13, %v89_v11  ;;  %p541_p10 = scmp.ne.s32.totalorder %s312_s26, %s540_s27  ;;  %p546_p12 = scmp.lt.s32.totalorder %s540_s27, %s540_s27 }
  0x3c   :  { %v435_v12 = vpack.c.bf16 %v104_v10, %v103_v9  ;;  %v122_v15 = vld [vmem:[#allocation6 + $0x198] sm:$0xff]  ;;  %434 = vmatprep.subr.bf16.mxu1 %v433_v7  ;;  %v73_v18 = vld [vmem:[#allocation6 + $0x10] sm:$0xff]  ;;  %v91_v23 = vld [vmem:[#allocation6 + $0xa0] sm:$0xff] }
  0x3d   :  { %404 = vmatpush3.bf16.msra.mxu0 %v403_v8  ;;  %v437_v17 = vpack.c.bf16 %v122_v15, %v121_v14  ;;  %v74_v19 = vld [vmem:[#allocation6 + $0x18] sm:$0xff]  ;;  %v105_v20 = vld [vmem:[#allocation6 + $0x110] sm:$0xff]  ;;  %v92_v24 = vld [vmem:[#allocation6 + $0xa8] sm:$0xff]  ;;  %p547_p13 = por %p546_p12, %p545_p11 }
  0x3e   :  { %436 = vmatpush3.bf16.msra.mxu1 %v435_v12  ;;  %v407_v21 = vpack.c.bf16 %v74_v19, %v73_v18  ;;  %v106_v22 = vld [vmem:[#allocation6 + $0x118] sm:$0xff]  ;;  %406 = vmatprep.subr.bf16.mxu0 %v405_v16  ;;  %v409_v26 = vpack.c.bf16 %v92_v24, %v91_v23  ;;  %v123_v27 = vld [vmem:[#allocation6 + $0x1a0] sm:$0xff]  ;;  %v124_v28 = vld [vmem:[#allocation6 + $0x1a8] sm:$0xff] }
  0x3f   :  { %438 = vmatprep.subr.bf16.mxu1 %v437_v17  ;;  %v439_v25 = vpack.c.bf16 %v106_v22, %v105_v20  ;;  %v75_v29 = vld [vmem:[#allocation6 + $0x20] sm:$0xff]  ;;  %v441_v30 = vpack.c.bf16 %v124_v28, %v123_v27  ;;  %v76_v31 = vld [vmem:[#allocation6 + $0x28] sm:$0xff]  ;;  %v93_v35 = vld [vmem:[#allocation6 + $0xb0] sm:$0xff]  ;;  %p548_p0 = pnand %p547_p13, %p541_p10 }
  0x40   :  { %v107_v32 = vld [vmem:[#allocation6 + $0x120] sm:$0xff]  ;;  %v108_v33 = vld [vmem:[#allocation6 + $0x128] sm:$0xff]  ;;  %v411_v34 = vpack.c.bf16 %v76_v31, %v75_v29  ;;  %v94_v36 = vld [vmem:[#allocation6 + $0xb8] sm:$0xff] }
  0x41   :  { %408 = vmatpush3.bf16.msra.mxu0 %v407_v21  ;;  %v125_v37 = vld [vmem:[#allocation6 + $0x1b0] sm:$0xff]  ;;  %v443_v38 = vpack.c.bf16 %v108_v33, %v107_v32  ;;  %v413_v39 = vpack.c.bf16 %v94_v36, %v93_v35  ;;  %v126_v40 = vld [vmem:[#allocation6 + $0x1b8] sm:$0xff]  ;;  %v95_v46 = vld [vmem:[#allocation6 + $0xc0] sm:$0xff] }
  0x42   :  { %440 = vmatpush3.bf16.msra.mxu1 %v439_v25  ;;  %410 = vmatprep.subr.bf16.mxu0 %v409_v26  ;;  %v77_v41 = vld [vmem:[#allocation6 + $0x30] sm:$0xff]  ;;  %v78_v42 = vld [vmem:[#allocation6 + $0x38] sm:$0xff]  ;;  %v445_v43 = vpack.c.bf16 %v126_v40, %v125_v37  ;;  %v96_v47 = vld [vmem:[#allocation6 + $0xc8] sm:$0xff]  ;;  %v575_v40 = vmov 0.0  }
  0x43   :  { %442 = vmatprep.subr.bf16.mxu1 %v441_v30  ;;  %v109_v44 = vld [vmem:[#allocation6 + $0x130] sm:$0xff]  ;;  %v110_v45 = vld [vmem:[#allocation6 + $0x138] sm:$0xff]  ;;  %v127_v48 = vld [vmem:[#allocation6 + $0x1c0] sm:$0xff]  ;;  %v415_v50 = vpack.c.bf16 %v78_v42, %v77_v41  ;;  %v417_v52 = vpack.c.bf16 %v96_v47, %v95_v46  ;;  %59 = vst.msk [vmem:[#allocation2] sm:$0xff] %vm58_vm0, %v575_v40 }
  0x44   :  { %v128_v49 = vld [vmem:[#allocation6 + $0x1c8] sm:$0xff]  ;;  %v447_v51 = vpack.c.bf16 %v110_v45, %v109_v44  ;;  %v79_v53 = vld [vmem:[#allocation6 + $0x40] sm:$0xff]  ;;  %v97_v58 = vld [vmem:[#allocation6 + $0xd0] sm:$0xff]  ;;  %60 = vst.msk [vmem:[#allocation2 + $0x8] sm:$0xff] %vm58_vm0, %v575_v40 }
  0x45   :  { %412 = vmatpush3.bf16.msra.mxu0 %v411_v34  ;;  %v80_v54 = vld [vmem:[#allocation6 + $0x48] sm:$0xff]  ;;  %v111_v55 = vld [vmem:[#allocation6 + $0x140] sm:$0xff]  ;;  %v449_v56 = vpack.c.bf16 %v128_v49, %v127_v48  ;;  %v98_v59 = vld [vmem:[#allocation6 + $0xd8] sm:$0xff] }
  0x46   :  { %444 = vmatpush3.bf16.msra.mxu1 %v443_v38  ;;  %414 = vmatprep.subr.bf16.mxu0 %v413_v39  ;;  %v112_v57 = vld [vmem:[#allocation6 + $0x148] sm:$0xff]  ;;  %v129_v60 = vld [vmem:[#allocation6 + $0x1d0] sm:$0xff]  ;;  %v130_v61 = vld [vmem:[#allocation6 + $0x1d8] sm:$0xff]  ;;  %v419_v62 = vpack.c.bf16 %v80_v54, %v79_v53  ;;  %v421_v0 = vpack.c.bf16 %v98_v59, %v97_v58 }
  0x47   :  { %446 = vmatprep.subr.bf16.mxu1 %v445_v43  ;;  %v451_v63 = vpack.c.bf16 %v112_v57, %v111_v55  ;;  %v81_v1 = vld [vmem:[#allocation6 + $0x50] sm:$0xff]  ;;  %v82_v2 = vld [vmem:[#allocation6 + $0x58] sm:$0xff]  ;;  %v453_v4 = vpack.c.bf16 %v130_v61, %v129_v60  ;;  %v99_v6 = vld [vmem:[#allocation6 + $0xe0] sm:$0xff] }
  0x48   :  { %v113_v3 = vld [vmem:[#allocation6 + $0x150] sm:$0xff]  ;;  %v114_v5 = vld [vmem:[#allocation6 + $0x158] sm:$0xff]  ;;  %v100_v7 = vld [vmem:[#allocation6 + $0xe8] sm:$0xff]  ;;  %v423_v10 = vpack.c.bf16 %v82_v2, %v81_v1 }
  0x49   :  { %416 = vmatpush3.bf16.msra.mxu0 %v415_v50  ;;  %v131_v8 = vld [vmem:[#allocation6 + $0x1e0] sm:$0xff]  ;;  %v132_v9 = vld [vmem:[#allocation6 + $0x1e8] sm:$0xff]  ;;  %v455_v13 = vpack.c.bf16 %v114_v5, %v113_v3  ;;  %v425_v14 = vpack.c.bf16 %v100_v7, %v99_v6  ;;  %v66_v17 = vld [vmem:[#allocation3 + $0x18] sm:$0xff] }
  0x4a   :  { %448 = vmatpush3.bf16.msra.mxu1 %v447_v51  ;;  %418 = vmatprep.subr.bf16.mxu0 %v417_v52  ;;  %v83_v11 = vld [vmem:[#allocation6 + $0x60] sm:$0xff]  ;;  %v84_v12 = vld [vmem:[#allocation6 + $0x68] sm:$0xff]  ;;  %v457_v18 = vpack.c.bf16 %v132_v9, %v131_v8  ;;  %v101_v20 = vld [vmem:[#allocation6 + $0xf0] sm:$0xff] }
  0x4b   :  { %450 = vmatprep.subr.bf16.mxu1 %v449_v56  ;;  %v115_v15 = vld [vmem:[#allocation6 + $0x160] sm:$0xff]  ;;  %v64_v16 = vld [vmem:[#allocation3 + $0x8] sm:$0xff]  ;;  %v102_v21 = vld [vmem:[#allocation6 + $0xf8] sm:$0xff]  ;;  %274 = vmatprep.mubr.f32.mxu1 %v66_v17  ;;  %v427_v24 = vpack.c.bf16 %v84_v12, %v83_v11 }
  0x4c   :  { %v116_v19 = vld [vmem:[#allocation6 + $0x168] sm:$0xff]  ;;  %199 = vmatprep.mubr.f32.mxu0 %v64_v16  ;;  %v133_v22 = vld [vmem:[#allocation6 + $0x1f0] sm:$0xff]  ;;  %v134_v23 = vld [vmem:[#allocation6 + $0x1f8] sm:$0xff]  ;;  %v429_v26 = vpack.c.bf16 %v102_v21, %v101_v20 }
  0x4d   :  { %420 = vmatpush3.bf16.msra.mxu0 %v419_v62  ;;  %v459_v25 = vpack.c.bf16 %v116_v19, %v115_v15  ;;  %v85_v27 = vld [vmem:[#allocation6 + $0x70] sm:$0xff]  ;;  %v86_v28 = vld [vmem:[#allocation6 + $0x78] sm:$0xff]  ;;  %v461_v29 = vpack.c.bf16 %v134_v23, %v133_v22  ;;  %v63_v34 = vld [vmem:[#allocation3] sm:$0xff] }
  0x4e   :  { %452 = vmatpush3.bf16.msra.mxu1 %v451_v63  ;;  %422 = vmatprep.subr.bf16.mxu0 %v421_v0  ;;  %v117_v30 = vld [vmem:[#allocation6 + $0x170] sm:$0xff]  ;;  %v118_v31 = vld [vmem:[#allocation6 + $0x178] sm:$0xff]  ;;  %v431_v32 = vpack.c.bf16 %v86_v28, %v85_v27  ;;  %v68_v36 = vld [vmem:[#allocation3 + $0x28] sm:$0xff] }
  0x4f   :  { %454 = vmatprep.subr.bf16.mxu1 %v453_v4  ;;  %v463_v33 = vpack.c.bf16 %v118_v31, %v117_v30  ;;  %v65_v35 = vld [vmem:[#allocation3 + $0x10] sm:$0xff]  ;;  %v70_v37 = vld [vmem:[#allocation3 + $0x38] sm:$0xff]  ;;  %v67_v38 = vld [vmem:[#allocation3 + $0x20] sm:$0xff] }
  0x50   :  { %v69_v39 = vld [vmem:[#allocation3 + $0x30] sm:$0xff]  ;;  %v62_v56 = vld [vmem:[#allocation2 + $0x8] sm:$0xff]  ;;  %v324_v59 = vld [vmem:[#allocation8] ss:$0 sm:$0xff] }
  0x51   :  { %424 = vmatpush3.bf16.msra.mxu0 %v423_v10  ;;  %v61_v47 = vld [vmem:[#allocation2] sm:$0xff] }
  0x52   :  { %456 = vmatpush3.bf16.msra.mxu1 %v455_v13  ;;  %426 = vmatprep.subr.bf16.mxu0 %v425_v14 }
  0x53   :  { %458 = vmatprep.subr.bf16.mxu1 %v457_v18 }
  0x55   :  { %428 = vmatpush3.bf16.msra.mxu0 %v427_v24 }
  0x56   :  { %460 = vmatpush3.bf16.msra.mxu1 %v459_v25  ;;  %430 = vmatprep.subr.bf16.mxu0 %v429_v26 }
  0x57   :  { %462 = vmatprep.subr.bf16.mxu1 %v461_v29 }
  0x59   :  { %432 = vmatpush3.bf16.msra.mxu0 %v431_v32 }
  0x5a   :  { %464 = vmatpush3.bf16.msra.mxu1 %v463_v33 }
  0x5c   :  { %200 = vmatmul.mubr.f32.vlgmr.msra.gmra.mrb[0].mxu0 %v63_v34 }
  0x5d   :  { %275 = vmatmul.mubr.f32.vlgmr.msra.gmra.mrb[0].mxu1 %v65_v35  ;;  %204 = vmatprep.mubr.f32.mxu0 %v68_v36 }
  0x5e   :  { %279 = vmatprep.mubr.f32.mxu1 %v70_v37 }
  0x60   :  { %205 = vmatmul.mubr.f32.gmra.mrb[2].mxu0 %v67_v38 }
  0x61   :  { %280 = vmatmul.mubr.f32.gmra.mrb[2].mxu1 %v69_v39 }
 0x12f   :  { %v357_v41 = vpop.f32.mrb[0].mxu0 }
 0x130   :  { %v395_v42 = vpop.f32.mrb[0].mxu1  ;;  %v358_v43 = vpop.f32.mrb[1].mxu0 }
 0x131   :  { %v359_v44 = vadd.f32 %v358_v43, %v357_v41  ;;  %v396_v45 = vpop.f32.mrb[1].mxu1 }
 0x132   :  { %v397_v46 = vadd.f32 %v396_v45, %v395_v42 }
 0x133   :  { %v360_v48 = vpop.f32.mrb[2].mxu0 }
 0x134   :  { %v277_v49 = vadd.f32 %v397_v46, %v359_v44  ;;  %v398_v50 = vpop.f32.mrb[2].mxu1  ;;  %v361_v51 = vpop.f32.mrb[3].mxu0 }
 0x135   :  { %v362_v52 = vadd.f32 %v361_v51, %v360_v48  ;;  %v399_v53 = vpop.f32.mrb[3].mxu1 }
 0x136   :  { %v285_v54 = vadd.f32 %v277_v49, %v61_v47  ;;  %v400_v55 = vadd.f32 %v399_v53, %v398_v50 }
 0x138   :  { %288 = vst.msk [vmem:[#allocation2] sm:$0xff] %vm58_vm0, %v285_v54  ;;  %v282_v57 = vadd.f32 %v400_v55, %v362_v52 }
 0x13a   :  { %v286_v58 = vadd.f32 %v282_v57, %v62_v56 }
 0x13c   :  { %289 = vst.msk [vmem:[#allocation2 + $0x8] sm:$0xff] %vm58_vm0, %v286_v58 }
 0x13f   :  { %v293_v60 = vld [vmem:[#allocation2] sm:$0xff] }
 0x140   :  { %v302_v61 = vadd.f32 %v324_v59, %v293_v60 }
 0x142   :  { %304 = vst.msk [vmem:[#allocation9] sm:$0xff] %vm58_vm0, %v302_v61 }
 0x143   :  { %v294_v62 = vld [vmem:[#allocation2 + $0x8] sm:$0xff] }
 0x144   :  { %v303_v63 = vadd.f32 %v324_v59, %v294_v62 }
 0x146   :  { %305 = vst.msk [vmem:[#allocation9 + $0x8] sm:$0xff] %vm58_vm0, %v303_v63 }
 0x147   :  { %551 = shalt.err (!%p548_p0)
}
 0x148   :  { %s552_s30 = scalar_lea.hbm %s660_s3, 256 }
 0x149   :  { %p553_p1 = scmp.ne.s32.totalorder %s660_s3, %s552_s30  ;;  %p556_p2 = scmp.lt.u32.totalorder %s552_s30, %s660_s3 }
 0x14b   :  { %p558_p3 = pnand %p556_p2, %p553_p1 }
 0x14d   :  { %561 = shalt.err (!%p558_p3)
}
 0x14e   :  { %317 = dma.vmem_to_hbm [thread:$0]  %s312_s26, 256, %s660_s3, [#allocation5], %s569_s22, %s569_s22, %s570_s23  }
 0x14f   :  { %566 = dma.done.wait [#allocation5], 256  }
 0x150   :  { %567 = vsyncadd [#allocation5], 4294967040 }
 0x151   :  { %321 = vsyncpa [#allocation4], 1 }
 0x152   :  { %322 = vsyncpa [#allocation7], 1 }
 0x153   :  { %323 = vsyncpa [#allocation5], 1 }

</bundles_post_ra>
